<compile_context>
chip_gen: v7x
topology: tpu7x:2x2x1
jax: 0.10.0
libtpu: 0.0.40
codegen_flags: <defaults>
</compile_context>

<pallas_src>
import functools

import jax
import jax.numpy as jnp
from jax import lax
from jax.experimental import pallas as pl
from jax.experimental.pallas import tpu as pltpu


def basic_block_kernel(x_ref, w1_ref, s1_ref, b1_ref, w2_ref, s2_ref, b2_ref,
                       out_ref, winb, *, out_mode):
    """One batch element per grid step.

    x_ref   : (1, H, W, C) f32     unpadded NHWC input (also supplies the residual)
    w1_ref  : (3, 3*C, C)  bf16    conv1 weights, kw folded into the contraction dim
    s1/b1   : (1, C)       f32     folded BN1 scale / bias
    w2_ref  : (3, 3*C, C)  bf16    conv2 weights, kw-folded
    s2/b2   : (1, C)       f32     folded BN2 scale / bias
    out_ref : (1, H*W, C) | (1, H, W*C) | (1, H, W, C)  f32 output block
    winb    : VMEM scratch (H+2, W, 3*C) bf16  kw-folded window shared by both convs
    """
    H, W, C = x_ref.shape[1], x_ref.shape[2], x_ref.shape[3]

    # column-index masks for the "SAME" padding along W (hoisted: built once per step)
    col = lax.broadcasted_iota(jnp.int32, (1, W, 1), 1)
    first_col = col == 0
    last_col = col == W - 1

    def fold_kw(v):
        # v: (H, W, C) f32.  Returns (H, W, 3C) bf16 with
        #   folded[y, w, kw*C + c] == zero_padded(v)[y, w + kw, c]
        # kw=0 slab: value at column w comes from column w-1 (zero at w=0)
        left = jnp.where(first_col, 0.0, pltpu.roll(v, shift=1, axis=1))
        # kw=2 slab: value at column w comes from column w+1 (zero at w=W-1)
        right = jnp.where(last_col, 0.0, pltpu.roll(v, shift=W - 1, axis=1))
        return jnp.concatenate([left, v, right], axis=-1).astype(winb.dtype)

    def conv3x3(w_ref):
        # winb rows [kh, kh+H) supply padded rows y+kh; contraction K = (kw, c) = 3*C.
        acc = None
        for kh in range(3):
            win = winb[kh:kh + H, :, :].reshape(H * W, 3 * C)
            part = jnp.dot(win, w_ref[kh], preferred_element_type=jnp.float32)
            acc = part if acc is None else acc + part
        return acc                                            # (H*W, C) f32

    x = x_ref[0]                                              # (H, W, C) f32

    # ---- padded top/bottom rows of the folded window; stay zero for both convs
    zrow = jnp.zeros((1, W, 3 * C), winb.dtype)
    winb[0:1, :, :] = zrow
    winb[H + 1:H + 2, :, :] = zrow

    # ---- conv1 + bn1 (folded) + relu
    winb[1:1 + H, :, :] = fold_kw(x)
    mid = conv3x3(w1_ref)
    mid = jnp.maximum(mid * s1_ref[...] + b1_ref[...], 0.0)   # (H*W, C) f32
    # TODO(synk): stream this epilogue into winb per row-stripe to avoid materializing mid.

    # ---- conv2 + bn2 (folded) + residual + relu
    winb[1:1 + H, :, :] = fold_kw(mid.reshape(H, W, C))
    out = conv3x3(w2_ref)
    out = out * s2_ref[...] + b2_ref[...]
    out = out + x.reshape(H * W, C)                           # residual (f32)
    out = jnp.maximum(out, 0.0)

    if out_mode == "hw_c":      # (1, H*W, C): already lane-dense, layout-preserving store
        out_ref[0] = out.astype(out_ref.dtype)
    elif out_mode == "h_wc":    # (1, H, W*C): lane-dense store when C is not a x128
        out_ref[0] = out.reshape(H, W * C).astype(out_ref.dtype)
    else:                       # (1, H, W, C): fallback
        out_ref[0] = out.reshape(H, W, C).astype(out_ref.dtype)


def basic_block(x_nchw, w1, g1, be1, rm1, rv1, w2, g2, be2, rm2, rv2, eps=1e-5):
    """x_nchw: (N, C, H, W) float32. Conv weights w1/w2 given in HWIO (3, 3, Cin, Cout)."""
    N, Cin, H, W = x_nchw.shape
    Cout = w1.shape[-1]
    assert Cin == Cout, "downsample=None requires in_channel == out_channel"
    C = Cout

    # NHWC: channels on lanes.
    # TODO(synk): accept NHWC activations directly to drop these HBM transpose round-trips.
    x = jnp.transpose(x_nchw, (0, 2, 3, 1)).astype(jnp.float32)

    # fold eval-mode BN into per-channel scale / bias
    inv1 = g1 / jnp.sqrt(rv1 + eps)
    s1 = inv1.reshape(1, C).astype(jnp.float32)
    b1 = (be1 - rm1 * inv1).reshape(1, C).astype(jnp.float32)
    inv2 = g2 / jnp.sqrt(rv2 + eps)
    s2 = inv2.reshape(1, C).astype(jnp.float32)
    b2 = (be2 - rm2 * inv2).reshape(1, C).astype(jnp.float32)

    # bf16 MXU operands; kw folded into the contraction dim: (3,3,Cin,Cout) -> (3,3*Cin,Cout)
    w1f = w1.astype(jnp.bfloat16).reshape(3, 3 * C, C)
    w2f = w2.astype(jnp.bfloat16).reshape(3, 3 * C, C)

    # output layout: prefer layout-preserving lane-dense stores
    if C % 128 == 0:
        out_mode = "hw_c"
        out_shape = jax.ShapeDtypeStruct((N, H * W, C), jnp.float32)
        out_spec = pl.BlockSpec((1, H * W, C), lambda n: (n, 0, 0))
    elif (W * C) % 128 == 0:
        out_mode = "h_wc"
        out_shape = jax.ShapeDtypeStruct((N, H, W * C), jnp.float32)
        out_spec = pl.BlockSpec((1, H, W * C), lambda n: (n, 0, 0))
    else:
        out_mode = "hwc"
        out_shape = jax.ShapeDtypeStruct((N, H, W, C), jnp.float32)
        out_spec = pl.BlockSpec((1, H, W, C), lambda n: (n, 0, 0, 0))

    # VMEM budget: double-buffered activation blocks, single-counted weights, bf16 scratch,
    # plus the f32 temporaries (mid / matmul accumulators / out) that live in VMEM.
    # Cap below physical VMEM (64 MiB per TensorCore on v7x).
    f32b, bf16b = 4, 2
    act_block = H * W * C * f32b                              # one input / output block
    weight_bytes = 2 * (3 * 3 * C * C) * bf16b + 4 * C * f32b
    scratch_bytes = (H + 2) * W * 3 * C * bf16b
    temp_bytes = 4 * H * W * C * f32b + H * W * 3 * C * bf16b
    footprint = 2 * (2 * act_block) + weight_bytes + scratch_bytes + temp_bytes
    try:
        vmem_cap = int(getattr(pltpu.get_tpu_info(), "vmem_capacity_bytes", 64 * 2 ** 20))
    except Exception:
        vmem_cap = 64 * 2 ** 20
    vmem_limit = int(max(16 * 2 ** 20,
                         min(vmem_cap - 8 * 2 ** 20,
                             max(32 * 2 ** 20, int(1.5 * footprint)))))

    kernel = functools.partial(basic_block_kernel, out_mode=out_mode)
    out = pl.pallas_call(
        kernel,
        out_shape=out_shape,
        grid_spec=pltpu.PrefetchScalarGridSpec(
            num_scalar_prefetch=0,
            grid=(N,),
            in_specs=[
                pl.BlockSpec((1, H, W, C), lambda n: (n, 0, 0, 0)),
                pl.BlockSpec((3, 3 * C, C), lambda n: (0, 0, 0)),
                pl.BlockSpec((1, C), lambda n: (0, 0)),
                pl.BlockSpec((1, C), lambda n: (0, 0)),
                pl.BlockSpec((3, 3 * C, C), lambda n: (0, 0, 0)),
                pl.BlockSpec((1, C), lambda n: (0, 0)),
                pl.BlockSpec((1, C), lambda n: (0, 0)),
            ],
            out_specs=out_spec,
            scratch_shapes=[pltpu.VMEM((H + 2, W, 3 * C), jnp.bfloat16)],
        ),
        compiler_params=pltpu.CompilerParams(
            dimension_semantics=("parallel",),
            vmem_limit_bytes=vmem_limit),
    )(x, w1f, s1, b1, w2f, s2, b2)

    out_nhwc = out.reshape(N, H, W, C)
    return jnp.transpose(out_nhwc, (0, 3, 1, 2))              # back to NCHW


def basic_block_reference(x_nchw, w1, g1, be1, rm1, rv1,
                          w2, g2, be2, rm2, rv2, eps=1e-5):
    """Pure-JAX reference (NHWC conv via lax), eval-mode BN."""
    x = jnp.transpose(x_nchw, (0, 2, 3, 1))
    dn = ("NHWC", "HWIO", "NHWC")

    def bn(y, g, be, rm, rv):
        return (y - rm) * (g / jnp.sqrt(rv + eps)) + be

    out = lax.conv_general_dilated(x, w1, (1, 1), "SAME", dimension_numbers=dn)
    out = jax.nn.relu(bn(out, g1, be1, rm1, rv1))
    out = lax.conv_general_dilated(out, w2, (1, 1), "SAME", dimension_numbers=dn)
    out = bn(out, g2, be2, rm2, rv2)
    out = jax.nn.relu(out + x)
    return jnp.transpose(out, (0, 3, 1, 2))


if __name__ == "__main__":
    def run_case(key, N, C, H, W, tag):
        ks = jax.random.split(key, 11)
        x = jax.random.normal(ks[0], (N, C, H, W), jnp.float32)
        w1 = 0.2 * jax.random.normal(ks[1], (3, 3, C, C), jnp.float32)
        w2 = 0.2 * jax.random.normal(ks[2], (3, 3, C, C), jnp.float32)
        g1 = 1.0 + 0.1 * jax.random.normal(ks[3], (C,), jnp.float32)
        be1 = 0.1 * jax.random.normal(ks[4], (C,), jnp.float32)
        rm1 = 0.1 * jax.random.normal(ks[5], (C,), jnp.float32)
        rv1 = 0.5 + jnp.abs(jax.random.normal(ks[6], (C,), jnp.float32))
        g2 = 1.0 + 0.1 * jax.random.normal(ks[7], (C,), jnp.float32)
        be2 = 0.1 * jax.random.normal(ks[8], (C,), jnp.float32)
        rm2 = 0.1 * jax.random.normal(ks[9], (C,), jnp.float32)
        rv2 = 0.5 + jnp.abs(jax.random.normal(ks[10], (C,), jnp.float32))

        out = jax.block_until_ready(
            basic_block(x, w1, g1, be1, rm1, rv1, w2, g2, be2, rm2, rv2))
        ref = basic_block_reference(x, w1, g1, be1, rm1, rv1, w2, g2, be2, rm2, rv2)
        assert out.shape == (N, C, H, W), (tag, out.shape)
        err = float(jnp.max(jnp.abs(out - ref)))
        scale = float(jnp.max(jnp.abs(ref))) + 1e-6
        # bf16 MXU operands -> tolerance relative to the output magnitude
        assert err <= 3e-2 * scale + 2e-2, (tag, err, scale)

    key = jax.random.PRNGKey(0)
    k1, k2, k3 = jax.random.split(key, 3)
    run_case(k1, 2, 4, 16, 16, "small-C4")     # fallback 4-D output path
    run_case(k2, 1, 64, 8, 8, "C64-h_wc")      # lane-dense (H, W*C) output path
    run_case(k3, 1, 128, 4, 8, "C128-hw_c")    # layout-preserving (H*W, C) output path
    print("KERNEL_OK")
</pallas_src>

<mosaic_0001>
module attributes {stable_mosaic.version = 11 : i64} {
  func.func @basic_block_kernel(%arg0: i32, %arg1: memref<1x16x16x4xf32, #tpu.memory_space<vmem>>, %arg2: memref<3x12x4xbf16, #tpu.memory_space<vmem>>, %arg3: memref<1x4xf32, #tpu.memory_space<vmem>>, %arg4: memref<1x4xf32, #tpu.memory_space<vmem>>, %arg5: memref<3x12x4xbf16, #tpu.memory_space<vmem>>, %arg6: memref<1x4xf32, #tpu.memory_space<vmem>>, %arg7: memref<1x4xf32, #tpu.memory_space<vmem>>, %arg8: memref<1x16x16x4xf32, #tpu.memory_space<vmem>>, %arg9: memref<18x16x12xbf16, #tpu.memory_space<vmem>>) attributes {dimension_semantics = [#tpu.dimension_semantics<parallel>], iteration_bounds = array<i64: 2>, scalar_prefetch = 0 : i64, scratch_operands = 1 : i64, tpu.core_type = #tpu.core_type<tc>, window_params = [{transform_indices = @transform_0, window_bounds = array<i64: 1, 16, 16, 4>}, {pipeline_mode = #tpu.pipeline_mode<synchronous>, transform_indices = @transform_1, window_bounds = array<i64: 3, 12, 4>}, {pipeline_mode = #tpu.pipeline_mode<synchronous>, transform_indices = @transform_2, window_bounds = array<i64: 1, 4>}, {pipeline_mode = #tpu.pipeline_mode<synchronous>, transform_indices = @transform_3, window_bounds = array<i64: 1, 4>}, {pipeline_mode = #tpu.pipeline_mode<synchronous>, transform_indices = @transform_4, window_bounds = array<i64: 3, 12, 4>}, {pipeline_mode = #tpu.pipeline_mode<synchronous>, transform_indices = @transform_5, window_bounds = array<i64: 1, 4>}, {pipeline_mode = #tpu.pipeline_mode<synchronous>, transform_indices = @transform_6, window_bounds = array<i64: 1, 4>}, {transform_indices = @transform_7, window_bounds = array<i64: 1, 16, 16, 4>}]} {
    %0 = tpu.iota {dimensions = array<i32: 1>} : vector<1x16x1xi32>
    %c0_i32 = arith.constant 0 : i32
    %1 = vector.broadcast %c0_i32 : i32 to vector<1x16x1xi32>
    %2 = arith.cmpi eq, %0, %1 : vector<1x16x1xi32>
    %c15_i32 = arith.constant 15 : i32
    %3 = vector.broadcast %c15_i32 : i32 to vector<1x16x1xi32>
    %4 = arith.cmpi eq, %0, %3 : vector<1x16x1xi32>
    %c0 = arith.constant 0 : index
    %c0_0 = arith.constant 0 : index
    %c0_1 = arith.constant 0 : index
    %c0_2 = arith.constant 0 : index
    %5 = vector.load %arg1[%c0, %c0_0, %c0_1, %c0_2] : memref<1x16x16x4xf32, #tpu.memory_space<vmem>>, vector<1x16x16x4xf32>
    %6 = vector.shape_cast %5 : vector<1x16x16x4xf32> to vector<16x16x4xf32>
    %cst = arith.constant 0.000000e+00 : bf16
    %7 = vector.broadcast %cst : bf16 to vector<1x16x12xbf16>
    %c0_3 = arith.constant 0 : index
    %c0_4 = arith.constant 0 : index
    %c0_5 = arith.constant 0 : index
    %8 = vector.load %arg9[%c0_3, %c0_4, %c0_5] : memref<18x16x12xbf16, #tpu.memory_space<vmem>>, vector<1x16x12xbf16>
    tpu.vector_store %arg9[%c0_3, %c0_4, %c0_5], %7 {strides = array<i32>} : memref<18x16x12xbf16, #tpu.memory_space<vmem>>, vector<1x16x12xbf16>,
    %c17 = arith.constant 17 : index
    %c0_6 = arith.constant 0 : index
    %c0_7 = arith.constant 0 : index
    %9 = vector.load %arg9[%c17, %c0_6, %c0_7] : memref<18x16x12xbf16, #tpu.memory_space<vmem>>, vector<1x16x12xbf16>
    tpu.vector_store %arg9[%c17, %c0_6, %c0_7], %7 {strides = array<i32>} : memref<18x16x12xbf16, #tpu.memory_space<vmem>>, vector<1x16x12xbf16>,
    %c1_i32 = arith.constant 1 : i32
    %10 = tpu.dynamic_rotate %6 by %c1_i32 dim 1 : vector<16x16x4xf32>, i32 -> vector<16x16x4xf32>
    %cst_8 = arith.constant 0.000000e+00 : f32
    %11 = vector.shape_cast %2 : vector<1x16x1xi1> to vector<1x16x1xi1>
    %12 = vector.broadcast %11 : vector<1x16x1xi1> to vector<16x16x4xi1>
    %13 = vector.broadcast %cst_8 : f32 to vector<16x16x4xf32>
    %14 = arith.select %12, %13, %10 : vector<16x16x4xi1>, vector<16x16x4xf32>
    %c15_i32_9 = arith.constant 15 : i32
    %15 = tpu.dynamic_rotate %6 by %c15_i32_9 dim 1 : vector<16x16x4xf32>, i32 -> vector<16x16x4xf32>
    %cst_10 = arith.constant 0.000000e+00 : f32
    %16 = vector.shape_cast %4 : vector<1x16x1xi1> to vector<1x16x1xi1>
    %17 = vector.broadcast %16 : vector<1x16x1xi1> to vector<16x16x4xi1>
    %18 = vector.broadcast %cst_10 : f32 to vector<16x16x4xf32>
    %19 = arith.select %17, %18, %15 : vector<16x16x4xi1>, vector<16x16x4xf32>
    %20 = tpu.concatenate %14, %6, %19 in 2 : vector<16x16x4xf32>, vector<16x16x4xf32>, vector<16x16x4xf32> -> vector<16x16x12xf32>
    %21 = arith.truncf %20 : vector<16x16x12xf32> to vector<16x16x12xbf16>
    %c1 = arith.constant 1 : index
    %c0_11 = arith.constant 0 : index
    %c0_12 = arith.constant 0 : index
    %22 = vector.load %arg9[%c1, %c0_11, %c0_12] : memref<18x16x12xbf16, #tpu.memory_space<vmem>>, vector<16x16x12xbf16>
    tpu.vector_store %arg9[%c1, %c0_11, %c0_12], %21 {strides = array<i32>} : memref<18x16x12xbf16, #tpu.memory_space<vmem>>, vector<16x16x12xbf16>,
    %c0_13 = arith.constant 0 : index
    %c0_14 = arith.constant 0 : index
    %c0_15 = arith.constant 0 : index
    %23 = vector.load %arg9[%c0_13, %c0_14, %c0_15] : memref<18x16x12xbf16, #tpu.memory_space<vmem>>, vector<16x16x12xbf16>
    %24 = vector.shape_cast %23 : vector<16x16x12xbf16> to vector<256x12xbf16>
    %c0_16 = arith.constant 0 : index
    %c0_17 = arith.constant 0 : index
    %c0_18 = arith.constant 0 : index
    %25 = vector.load %arg2[%c0_16, %c0_17, %c0_18] : memref<3x12x4xbf16, #tpu.memory_space<vmem>>, vector<1x12x4xbf16>
    %26 = vector.shape_cast %25 : vector<1x12x4xbf16> to vector<12x4xbf16>
    %cst_19 = arith.constant dense<0.000000e+00> : vector<256x4xf32>
    %27 = tpu.matmul %24, %26, %cst_19 {dimension_numbers = #tpu.dot_dimension_numbers<[1], [0], [0], [1], [0, 0, 1, 1], [], []>} : vector<256x12xbf16>, vector<12x4xbf16>, vector<256x4xf32> -> vector<256x4xf32>
    %c1_20 = arith.constant 1 : index
    %c0_21 = arith.constant 0 : index
    %c0_22 = arith.constant 0 : index
    %28 = vector.load %arg9[%c1_20, %c0_21, %c0_22] : memref<18x16x12xbf16, #tpu.memory_space<vmem>>, vector<16x16x12xbf16>
    %29 = vector.shape_cast %28 : vector<16x16x12xbf16> to vector<256x12xbf16>
    %c1_23 = arith.constant 1 : index
    %c0_24 = arith.constant 0 : index
    %c0_25 = arith.constant 0 : index
    %30 = vector.load %arg2[%c1_23, %c0_24, %c0_25] : memref<3x12x4xbf16, #tpu.memory_space<vmem>>, vector<1x12x4xbf16>
    %31 = vector.shape_cast %30 : vector<1x12x4xbf16> to vector<12x4xbf16>
    %cst_26 = arith.constant dense<0.000000e+00> : vector<256x4xf32>
    %32 = tpu.matmul %29, %31, %cst_26 {dimension_numbers = #tpu.dot_dimension_numbers<[1], [0], [0], [1], [0, 0, 1, 1], [], []>} : vector<256x12xbf16>, vector<12x4xbf16>, vector<256x4xf32> -> vector<256x4xf32>
    %33 = arith.addf %27, %32 : vector<256x4xf32>
    %c2 = arith.constant 2 : index
    %c0_27 = arith.constant 0 : index
    %c0_28 = arith.constant 0 : index
    %34 = vector.load %arg9[%c2, %c0_27, %c0_28] : memref<18x16x12xbf16, #tpu.memory_space<vmem>>, vector<16x16x12xbf16>
    %35 = vector.shape_cast %34 : vector<16x16x12xbf16> to vector<256x12xbf16>
    %c2_29 = arith.constant 2 : index
    %c0_30 = arith.constant 0 : index
    %c0_31 = arith.constant 0 : index
    %36 = vector.load %arg2[%c2_29, %c0_30, %c0_31] : memref<3x12x4xbf16, #tpu.memory_space<vmem>>, vector<1x12x4xbf16>
    %37 = vector.shape_cast %36 : vector<1x12x4xbf16> to vector<12x4xbf16>
    %cst_32 = arith.constant dense<0.000000e+00> : vector<256x4xf32>
    %38 = tpu.matmul %35, %37, %cst_32 {dimension_numbers = #tpu.dot_dimension_numbers<[1], [0], [0], [1], [0, 0, 1, 1], [], []>} : vector<256x12xbf16>, vector<12x4xbf16>, vector<256x4xf32> -> vector<256x4xf32>
    %39 = arith.addf %33, %38 : vector<256x4xf32>
    %c0_33 = arith.constant 0 : index
    %c0_34 = arith.constant 0 : index
    %40 = vector.load %arg3[%c0_33, %c0_34] : memref<1x4xf32, #tpu.memory_space<vmem>>, vector<1x4xf32>
    %41 = vector.broadcast %40 : vector<1x4xf32> to vector<256x4xf32>
    %42 = arith.mulf %39, %41 : vector<256x4xf32>
    %c0_35 = arith.constant 0 : index
    %c0_36 = arith.constant 0 : index
    %43 = vector.load %arg4[%c0_35, %c0_36] : memref<1x4xf32, #tpu.memory_space<vmem>>, vector<1x4xf32>
    %44 = vector.broadcast %43 : vector<1x4xf32> to vector<256x4xf32>
    %45 = arith.addf %42, %44 : vector<256x4xf32>
    %cst_37 = arith.constant 0.000000e+00 : f32
    %46 = vector.broadcast %cst_37 : f32 to vector<256x4xf32>
    %47 = arith.maximumf %45, %46 : vector<256x4xf32>
    %48 = vector.shape_cast %47 : vector<256x4xf32> to vector<16x16x4xf32>
    %c1_i32_38 = arith.constant 1 : i32
    %49 = tpu.dynamic_rotate %48 by %c1_i32_38 dim 1 : vector<16x16x4xf32>, i32 -> vector<16x16x4xf32>
    %cst_39 = arith.constant 0.000000e+00 : f32
    %50 = vector.shape_cast %2 : vector<1x16x1xi1> to vector<1x16x1xi1>
    %51 = vector.broadcast %50 : vector<1x16x1xi1> to vector<16x16x4xi1>
    %52 = vector.broadcast %cst_39 : f32 to vector<16x16x4xf32>
    %53 = arith.select %51, %52, %49 : vector<16x16x4xi1>, vector<16x16x4xf32>
    %c15_i32_40 = arith.constant 15 : i32
    %54 = tpu.dynamic_rotate %48 by %c15_i32_40 dim 1 : vector<16x16x4xf32>, i32 -> vector<16x16x4xf32>
    %cst_41 = arith.constant 0.000000e+00 : f32
    %55 = vector.shape_cast %4 : vector<1x16x1xi1> to vector<1x16x1xi1>
    %56 = vector.broadcast %55 : vector<1x16x1xi1> to vector<16x16x4xi1>
    %57 = vector.broadcast %cst_41 : f32 to vector<16x16x4xf32>
    %58 = arith.select %56, %57, %54 : vector<16x16x4xi1>, vector<16x16x4xf32>
    %59 = tpu.concatenate %53, %48, %58 in 2 : vector<16x16x4xf32>, vector<16x16x4xf32>, vector<16x16x4xf32> -> vector<16x16x12xf32>
    %60 = arith.truncf %59 : vector<16x16x12xf32> to vector<16x16x12xbf16>
    %c1_42 = arith.constant 1 : index
    %c0_43 = arith.constant 0 : index
    %c0_44 = arith.constant 0 : index
    %61 = vector.load %arg9[%c1_42, %c0_43, %c0_44] : memref<18x16x12xbf16, #tpu.memory_space<vmem>>, vector<16x16x12xbf16>
    tpu.vector_store %arg9[%c1_42, %c0_43, %c0_44], %60 {strides = array<i32>} : memref<18x16x12xbf16, #tpu.memory_space<vmem>>, vector<16x16x12xbf16>,
    %c0_45 = arith.constant 0 : index
    %c0_46 = arith.constant 0 : index
    %c0_47 = arith.constant 0 : index
    %62 = vector.load %arg9[%c0_45, %c0_46, %c0_47] : memref<18x16x12xbf16, #tpu.memory_space<vmem>>, vector<16x16x12xbf16>
    %63 = vector.shape_cast %62 : vector<16x16x12xbf16> to vector<256x12xbf16>
    %c0_48 = arith.constant 0 : index
    %c0_49 = arith.constant 0 : index
    %c0_50 = arith.constant 0 : index
    %64 = vector.load %arg5[%c0_48, %c0_49, %c0_50] : memref<3x12x4xbf16, #tpu.memory_space<vmem>>, vector<1x12x4xbf16>
    %65 = vector.shape_cast %64 : vector<1x12x4xbf16> to vector<12x4xbf16>
    %cst_51 = arith.constant dense<0.000000e+00> : vector<256x4xf32>
    %66 = tpu.matmul %63, %65, %cst_51 {dimension_numbers = #tpu.dot_dimension_numbers<[1], [0], [0], [1], [0, 0, 1, 1], [], []>} : vector<256x12xbf16>, vector<12x4xbf16>, vector<256x4xf32> -> vector<256x4xf32>
    %c1_52 = arith.constant 1 : index
    %c0_53 = arith.constant 0 : index
    %c0_54 = arith.constant 0 : index
    %67 = vector.load %arg9[%c1_52, %c0_53, %c0_54] : memref<18x16x12xbf16, #tpu.memory_space<vmem>>, vector<16x16x12xbf16>
    %68 = vector.shape_cast %67 : vector<16x16x12xbf16> to vector<256x12xbf16>
    %c1_55 = arith.constant 1 : index
    %c0_56 = arith.constant 0 : index
    %c0_57 = arith.constant 0 : index
    %69 = vector.load %arg5[%c1_55, %c0_56, %c0_57] : memref<3x12x4xbf16, #tpu.memory_space<vmem>>, vector<1x12x4xbf16>
    %70 = vector.shape_cast %69 : vector<1x12x4xbf16> to vector<12x4xbf16>
    %cst_58 = arith.constant dense<0.000000e+00> : vector<256x4xf32>
    %71 = tpu.matmul %68, %70, %cst_58 {dimension_numbers = #tpu.dot_dimension_numbers<[1], [0], [0], [1], [0, 0, 1, 1], [], []>} : vector<256x12xbf16>, vector<12x4xbf16>, vector<256x4xf32> -> vector<256x4xf32>
    %72 = arith.addf %66, %71 : vector<256x4xf32>
    %c2_59 = arith.constant 2 : index
    %c0_60 = arith.constant 0 : index
    %c0_61 = arith.constant 0 : index
    %73 = vector.load %arg9[%c2_59, %c0_60, %c0_61] : memref<18x16x12xbf16, #tpu.memory_space<vmem>>, vector<16x16x12xbf16>
    %74 = vector.shape_cast %73 : vector<16x16x12xbf16> to vector<256x12xbf16>
    %c2_62 = arith.constant 2 : index
    %c0_63 = arith.constant 0 : index
    %c0_64 = arith.constant 0 : index
    %75 = vector.load %arg5[%c2_62, %c0_63, %c0_64] : memref<3x12x4xbf16, #tpu.memory_space<vmem>>, vector<1x12x4xbf16>
    %76 = vector.shape_cast %75 : vector<1x12x4xbf16> to vector<12x4xbf16>
    %cst_65 = arith.constant dense<0.000000e+00> : vector<256x4xf32>
    %77 = tpu.matmul %74, %76, %cst_65 {dimension_numbers = #tpu.dot_dimension_numbers<[1], [0], [0], [1], [0, 0, 1, 1], [], []>} : vector<256x12xbf16>, vector<12x4xbf16>, vector<256x4xf32> -> vector<256x4xf32>
    %78 = arith.addf %72, %77 : vector<256x4xf32>
    %c0_66 = arith.constant 0 : index
    %c0_67 = arith.constant 0 : index
    %79 = vector.load %arg6[%c0_66, %c0_67] : memref<1x4xf32, #tpu.memory_space<vmem>>, vector<1x4xf32>
    %80 = vector.broadcast %79 : vector<1x4xf32> to vector<256x4xf32>
    %81 = arith.mulf %78, %80 : vector<256x4xf32>
    %c0_68 = arith.constant 0 : index
    %c0_69 = arith.constant 0 : index
    %82 = vector.load %arg7[%c0_68, %c0_69] : memref<1x4xf32, #tpu.memory_space<vmem>>, vector<1x4xf32>
    %83 = vector.broadcast %82 : vector<1x4xf32> to vector<256x4xf32>
    %84 = arith.addf %81, %83 : vector<256x4xf32>
    %85 = vector.shape_cast %6 : vector<16x16x4xf32> to vector<256x4xf32>
    %86 = arith.addf %84, %85 : vector<256x4xf32>
    %cst_70 = arith.constant 0.000000e+00 : f32
    %87 = vector.broadcast %cst_70 : f32 to vector<256x4xf32>
    %88 = arith.maximumf %86, %87 : vector<256x4xf32>
    %89 = vector.shape_cast %88 : vector<256x4xf32> to vector<16x16x4xf32>
    %c0_71 = arith.constant 0 : index
    %c0_72 = arith.constant 0 : index
    %c0_73 = arith.constant 0 : index
    %c0_74 = arith.constant 0 : index
    %90 = vector.load %arg8[%c0_71, %c0_72, %c0_73, %c0_74] : memref<1x16x16x4xf32, #tpu.memory_space<vmem>>, vector<1x16x16x4xf32>
    %91 = vector.shape_cast %90 : vector<1x16x16x4xf32> to vector<16x16x4xf32>
    %92 = vector.shape_cast %89 : vector<16x16x4xf32> to vector<1x16x16x4xf32>
    tpu.vector_store %arg8[%c0_71, %c0_72, %c0_73, %c0_74], %92 {strides = array<i32>} : memref<1x16x16x4xf32, #tpu.memory_space<vmem>>, vector<1x16x16x4xf32>,
    return
  }
  func.func @transform_0(%arg0: i32) -> (i32, i32, i32, i32) {
    %c0_i32 = arith.constant 0 : i32
    %c0_i32_0 = arith.constant 0 : i32
    %c0_i32_1 = arith.constant 0 : i32
    %c0_i32_2 = arith.constant 0 : i32
    return %arg0, %c0_i32, %c0_i32_0, %c0_i32_1 : i32, i32, i32, i32
  }
  func.func @transform_1(%arg0: i32) -> (i32, i32, i32) {
    %c0_i32 = arith.constant 0 : i32
    %c0_i32_0 = arith.constant 0 : i32
    %c0_i32_1 = arith.constant 0 : i32
    %c0_i32_2 = arith.constant 0 : i32
    return %c0_i32, %c0_i32_0, %c0_i32_1 : i32, i32, i32
  }
  func.func @transform_2(%arg0: i32) -> (i32, i32) {
    %c0_i32 = arith.constant 0 : i32
    %c0_i32_0 = arith.constant 0 : i32
    %c0_i32_1 = arith.constant 0 : i32
    return %c0_i32, %c0_i32_0 : i32, i32
  }
  func.func @transform_3(%arg0: i32) -> (i32, i32) {
    %c0_i32 = arith.constant 0 : i32
    %c0_i32_0 = arith.constant 0 : i32
    %c0_i32_1 = arith.constant 0 : i32
    return %c0_i32, %c0_i32_0 : i32, i32
  }
  func.func @transform_4(%arg0: i32) -> (i32, i32, i32) {
    %c0_i32 = arith.constant 0 : i32
    %c0_i32_0 = arith.constant 0 : i32
    %c0_i32_1 = arith.constant 0 : i32
    %c0_i32_2 = arith.constant 0 : i32
    return %c0_i32, %c0_i32_0, %c0_i32_1 : i32, i32, i32
  }
  func.func @transform_5(%arg0: i32) -> (i32, i32) {
    %c0_i32 = arith.constant 0 : i32
    %c0_i32_0 = arith.constant 0 : i32
    %c0_i32_1 = arith.constant 0 : i32
    return %c0_i32, %c0_i32_0 : i32, i32
  }
  func.func @transform_6(%arg0: i32) -> (i32, i32) {
    %c0_i32 = arith.constant 0 : i32
    %c0_i32_0 = arith.constant 0 : i32
    %c0_i32_1 = arith.constant 0 : i32
    return %c0_i32, %c0_i32_0 : i32, i32
  }
  func.func @transform_7(%arg0: i32) -> (i32, i32, i32, i32) {
    %c0_i32 = arith.constant 0 : i32
    %c0_i32_0 = arith.constant 0 : i32
    %c0_i32_1 = arith.constant 0 : i32
    %c0_i32_2 = arith.constant 0 : i32
    return %arg0, %c0_i32, %c0_i32_0, %c0_i32_1 : i32, i32, i32, i32
  }
}

</mosaic_0001>

<bundles_post_ra>
// kernel: tpu_custom_call.1
= control target key start
LH: loop header
LB: loop body
LE: loop exit
PB: predicated region body
PF: predicated region fallthrough
CT: control target
= control target key end

     0   :  { %s4230_s24 = smov 0   ;;  %s5863_s0 = inlined_call_operand.vmem [shape: f32[2,16,16,4], index: 0, kind: input, shape index: {}]   ;;  %s5864_s1 = inlined_call_operand.vmem [shape: bf16[3,12,4], index: 1, kind: input, shape index: {}]   ;;  %s5865_s2 = inlined_call_operand.vmem [shape: f32[1,4], index: 2, kind: input, shape index: {}]   ;;  %s5866_s3 = inlined_call_operand.vmem [shape: f32[1,4], index: 3, kind: input, shape index: {}]   ;;  %s5867_s4 = inlined_call_operand.vmem [shape: bf16[3,12,4], index: 4, kind: input, shape index: {}]   ;;  %s5868_s5 = inlined_call_operand.vmem [shape: f32[1,4], index: 5, kind: input, shape index: {}]   ;;  %s5869_s6 = inlined_call_operand.vmem [shape: f32[1,4], index: 6, kind: input, shape index: {}]   ;;  %s5870_s7 = inlined_call_operand.vmem [shape: f32[2,16,16,4], index: 7, kind: output, shape index: {}]  }
   0x1 LB: > { %s3243_s25 = sadd.s32 4294967295, %s4185_s24   ;;  %p3247_p0 = scmp.ge.s32.totalorder %s4185_s24, 1  ;;  %s4185_s24 = sphi %s4230_s24, %s17_s24  }
   0x2   : > { %p237_p1 = scmp.lt.s32.totalorder %s4185_s24, 3 }
   0x4   : > { %p238_p2 = pnand %p3247_p0, %p237_p1 }
   0x5   : > { %p269_p3 = scmp.lt.s32.totalorder (!%p238_p2), %s3243_s25, 1  ;;  %v280_v0 = vlaneseq (!%p238_p2)  ;;  %s4187_s30 = smov (!%p238_p2), 4   ;;  %vm970_vm2 = vcmask (!%p238_p2), 1045504   ;;  %vm319_vm3 = vcmask (!%p238_p2), 97280   ;;  %vm781_vm6 = vcmask (!%p238_p2), 31744  }
   0x6   : > { %241 = sbr.rel (%p238_p2) target bundleno = 1048 (0x418), region = 48  ;;  %s4188_s8 = smov (!%p238_p2), 8   ;;  %vm814_vm7 = vcmask (!%p238_p2), 64512  }
   0x7   : > { %v4240_v1 = vshrl.u32 (!%p238_p2), %v280_v0, 7 }
   0x9   : > { %v4244_v2 = vadd.s32 (!%p238_p2), 8, %v4240_v1  ;;  %vm456_vm0 = vcmp.lt.s32.totalorder (!%p238_p2), %v4240_v1, 7  ;;  %vm355_vm4 = vcmp.lt.s32.totalorder (!%p238_p2), %v4240_v1, 1  ;;  %vm283_vm5 = vcmp.eq.s32.totalorder (!%p238_p2), %v4240_v1, 0 }
   0xb   : > { %vm286_vm1 = vcmp.eq.s32.totalorder (!%p238_p2), %v4244_v2, 15 }
   0xd   : > { %s5872_s25 = smov (!%p269_p3, %s3243_s25), 1 }
   0xe   : > { %s3368_s26 = sshll.u32 %s5872_s25, 8 }
   0xf   : > { %s4251_s29 = scalar_lea.vmem %s5863_s0, %s3368_s26  ;;  %s5706_s12 = scalar_lea.vmem %s5870_s7, %s3368_s26 }
  0x10   : > { %v4254_v3 = vld [vmem:[%s4251_s29] sm:$0xff]  ;;  %v4257_v4 = vld [vmem:[%s4251_s29 + $0x8] sm:$0xff]  ;;  %v4260_v5 = vld [vmem:[%s4251_s29 + $0x10] sm:$0xff] }
  0x11   : > { %v3821_v6 = vpack.i.bf16 %v4257_v4, %v4254_v3  ;;  %v4265_v7 = vld [vmem:[%s4251_s29 + $0x18] sm:$0xff]  ;;  %v4269_v8 = vld [vmem:[%s4251_s29 + $0x20] sm:$0xff]  ;;  %v424_v9 = vrot.slane %v4254_v3, 1  ;;  %v440_v10 = vrot.slane %v4257_v4, 1  ;;  %v4275_v11 = vld [vmem:[%s4251_s29 + $0x28] sm:$0xff]  ;;  %v425_v13 = vrot.slane %v4260_v5, 1 }
  0x12   : > { %v3826_v12 = vpack.i.bf16 %v4265_v7, %v4260_v5  ;;  %v441_v16 = vrot.slane %v4265_v7, 1  ;;  %v426_v17 = vrot.slane %v4269_v8, 1  ;;  %v442_v19 = vrot.slane %v4275_v11, 1  ;;  %v4295_v23 = vld [vmem:[%s4251_s29 + $0x30] sm:$0xff]  ;;  %v4298_v24 = vld [vmem:[%s4251_s29 + $0x38] sm:$0xff]  ;;  %v4301_v25 = vld [vmem:[%s4251_s29 + $0x40] sm:$0xff] }
  0x13   : > { %3822 = vrot.lane.b32.xlu0 %v3821_v6, %s4187_s30  ;;  %v457_v14 = vsel %vm456_vm0, %v424_v9, %v440_v10  ;;  %v473_v15 = vsel %vm456_vm0, %v440_v10, %v424_v9  ;;  %v3831_v26 = vpack.i.bf16 %v4275_v11, %v4269_v8  ;;  %v4311_v29 = vld [vmem:[%s4251_s29 + $0x48] sm:$0xff]  ;;  %v427_v33 = vrot.slane %v4295_v23, 1  ;;  %v4326_v39 = vld [vmem:[%s4251_s29 + $0x50] sm:$0xff]  ;;  %v4329_v40 = vld [vmem:[%s4251_s29 + $0x58] sm:$0xff] }
  0x14   : > { %v494_v18 = vsel %vm286_vm1, 0.0, %v473_v15  ;;  %v458_v21 = vsel %vm456_vm0, %v425_v13, %v441_v16  ;;  %v474_v22 = vsel %vm456_vm0, %v441_v16, %v425_v13  ;;  %v475_v28 = vsel %vm456_vm0, %v442_v19, %v426_v17  ;;  %v4341_v45 = vld [vmem:[%s4251_s29 + $0x60] sm:$0xff]  ;;  %v4344_v46 = vld [vmem:[%s4251_s29 + $0x68] sm:$0xff]  ;;  %v4362_v57 = vld [vmem:[%s4251_s29 + $0x70] sm:$0xff] }
  0x15   : > { %v3836_v20 = vpack.i.bf16 %v494_v18, %v457_v14  ;;  %v496_v27 = vsel %vm286_vm1, 0.0, %v474_v22  ;;  %v459_v31 = vsel %vm456_vm0, %v426_v17, %v442_v19  ;;  %v498_v32 = vsel %vm286_vm1, 0.0, %v475_v28  ;;  %v4365_v58 = vld [vmem:[%s4251_s29 + $0x78] sm:$0xff]  ;;  %v4377_v63 = vld [vmem:[%s4251_s29 + $0x80] sm:$0xff]  ;;  %v4380_v0 = vld [vmem:[%s4251_s29 + $0x88] sm:$0xff] }
  0x16   : > { %v3841_v30 = vpack.i.bf16 %v496_v27, %v458_v21  ;;  %v443_v34 = vrot.slane %v4298_v24, 1  ;;  %v428_v35 = vrot.slane %v4301_v25, 1  ;;  %v444_v36 = vrot.slane %v4311_v29, 1  ;;  %v4398_v19 = vld [vmem:[%s4251_s29 + $0x90] sm:$0xff]  ;;  %v4413_v28 = vld [vmem:[%s4251_s29 + $0xa0] sm:$0xff] }
  0x17   : > { %3827 = vrot.lane.b32.xlu0 %v3826_v12, %s4187_s30  ;;  %3837 = vrot.lane.b32.xlu1 %v3836_v20, %s4188_s8  ;;  %v3851_v37 = vpack.i.bf16 %v498_v32, %v459_v31  ;;  %v3846_v41 = vpack.i.bf16 %v4298_v24, %v4295_v23  ;;  %v429_v47 = vrot.slane %v4326_v39, 1  ;;  %v445_v48 = vrot.slane %v4329_v40, 1  ;;  %v4401_v20 = vld [vmem:[%s4251_s29 + $0x98] sm:$0xff] }
  0x18   : > { %v476_v38 = vsel %vm456_vm0, %v443_v34, %v427_v33  ;;  %v460_v42 = vsel %vm456_vm0, %v427_v33, %v443_v34  ;;  %v477_v44 = vsel %vm456_vm0, %v444_v36, %v428_v35  ;;  %v3861_v49 = vpack.i.bf16 %v4311_v29, %v4301_v25 }
  0x19   : > { %v500_v43 = vsel %vm286_vm1, 0.0, %v476_v38  ;;  %v461_v51 = vsel %vm456_vm0, %v428_v35, %v444_v36  ;;  %v502_v52 = vsel %vm286_vm1, 0.0, %v477_v44  ;;  %v430_v53 = vrot.slane %v4341_v45, 1  ;;  %v4437_v44 = vld [vmem:[%s4251_s29 + $0xb8] sm:$0xff] }
  0x1a   : > { %v3856_v50 = vpack.i.bf16 %v500_v43, %v460_v42  ;;  %v446_v54 = vrot.slane %v4344_v46, 1  ;;  %v478_v55 = vsel %vm456_vm0, %v445_v48, %v429_v47  ;;  %v3871_v56 = vpack.i.bf16 %v502_v52, %v461_v51  ;;  %v4434_v43 = vld [vmem:[%s4251_s29 + $0xb0] sm:$0xff]  ;;  %v4141_v51 = vld [vmem:[%s5864_s1 + $0x8] sm:$0x3f]   ;;  %v4452_v52 = vld [vmem:[%s4251_s29 + $0xc0] sm:$0xff] }
  0x1b   : > { %3832 = vrot.lane.b32.xlu0 %v3831_v26, %s4187_s30  ;;  %3842 = vrot.lane.b32.xlu1 %v3841_v30, %s4188_s8  ;;  %v3866_v59 = vpack.i.bf16 %v4329_v40, %v4326_v39  ;;  %v462_v60 = vsel %vm456_vm0, %v429_v47, %v445_v48  ;;  %v504_v61 = vsel %vm286_vm1, 0.0, %v478_v55  ;;  %v431_v6 = vrot.slane %v4362_v57, 1  ;;  %v4416_v30 = vld [vmem:[%s4251_s29 + $0xa8] sm:$0xff] }
  0x1c   : > { %v479_v62 = vsel %vm456_vm0, %v446_v54, %v430_v53  ;;  %v447_v9 = vrot.slane %v4365_v58, 1  ;;  %v3881_v10 = vpack.i.bf16 %v4344_v46, %v4341_v45  ;;  %v3876_v12 = vpack.i.bf16 %v504_v61, %v462_v60  ;;  %3804 = vmatprep.subr.msk.bf16.mxu0 %vm970_vm2, %v4141_v51 }
  0x1d   : > { %v463_v13 = vsel %vm456_vm0, %v430_v53, %v446_v54  ;;  %v506_v14 = vsel %vm286_vm1, 0.0, %v479_v62  ;;  %v432_v15 = vrot.slane %v4377_v63, 1  ;;  %v448_v16 = vrot.slane %v4380_v0, 1  ;;  %v4455_v53 = vld [vmem:[%s4251_s29 + $0xc8] sm:$0xff] }
  0x1e   : > { %v480_v17 = vsel %vm456_vm0, %v447_v9, %v431_v6  ;;  %v3891_v18 = vpack.i.bf16 %v506_v14, %v463_v13  ;;  %v3886_v21 = vpack.i.bf16 %v4365_v58, %v4362_v57  ;;  %v464_v22 = vsel %vm456_vm0, %v431_v6, %v447_v9  ;;  %v4480_v14 = vld [vmem:[%s4251_s29 + $0xd0] sm:$0xff] }
  0x1f   : > { %3852 = vrot.lane.b32.xlu0 %v3851_v37, %s4188_s8  ;;  %3847 = vrot.lane.b32.xlu1 %v3846_v41, %s4187_s30  ;;  %v508_v26 = vsel %vm286_vm1, 0.0, %v480_v17  ;;  %v481_v27 = vsel %vm456_vm0, %v448_v16, %v432_v15  ;;  %v433_v31 = vrot.slane %v4398_v19, 1  ;;  %v449_v32 = vrot.slane %v4401_v20, 1 }
  0x20   : > { %v3901_v33 = vpack.i.bf16 %v4380_v0, %v4377_v63  ;;  %v3896_v34 = vpack.i.bf16 %v508_v26, %v464_v22  ;;  %v465_v35 = vsel %vm456_vm0, %v432_v15, %v448_v16  ;;  %v510_v36 = vsel %vm286_vm1, 0.0, %v481_v27  ;;  %v4483_v15 = vld [vmem:[%s4251_s29 + $0xd8] sm:$0xff]  ;;  %v4497_v22 = vld [vmem:[%s4251_s29 + $0xe0] sm:$0xff]  ;;  %v4500_v26 = vld [vmem:[%s4251_s29 + $0xe8] sm:$0xff] }
  0x21   : > { %v434_v37 = vrot.slane %v4413_v28, 1  ;;  %v450_v38 = vrot.slane %v4416_v30, 1  ;;  %v482_v41 = vsel %vm456_vm0, %v449_v32, %v433_v31  ;;  %v3911_v42 = vpack.i.bf16 %v510_v36, %v465_v35 }
  0x22   : > { %v3906_v47 = vpack.i.bf16 %v4401_v20, %v4398_v19  ;;  %v466_v48 = vsel %vm456_vm0, %v433_v31, %v449_v32  ;;  %v435_v54 = vrot.slane %v4434_v43, 1  ;;  %v451_v55 = vrot.slane %v4437_v44, 1 }
  0x23   : > { %3862 = vrot.lane.b32.xlu0 %v3861_v49, %s4187_s30  ;;  %3857 = vrot.lane.b32.xlu1 %v3856_v50, %s4188_s8  ;;  %v512_v49 = vsel %vm286_vm1, 0.0, %v482_v41  ;;  %v483_v50 = vsel %vm456_vm0, %v450_v38, %v434_v37  ;;  %v467_v61 = vsel %vm456_vm0, %v434_v37, %v450_v38  ;;  %v436_v6 = vrot.slane %v4452_v52, 1 }
  0x24   : > { %v3916_v60 = vpack.i.bf16 %v512_v49, %v466_v48  ;;  %v514_v62 = vsel %vm286_vm1, 0.0, %v483_v50  ;;  %v452_v9 = vrot.slane %v4455_v53, 1  ;;  %v3926_v16 = vpack.i.bf16 %v4437_v44, %v4434_v43 }
  0x25   : > { %v3931_v13 = vpack.i.bf16 %v514_v62, %v467_v61  ;;  %v468_v17 = vsel %vm456_vm0, %v435_v54, %v451_v55  ;;  %v437_v27 = vrot.slane %v4480_v14, 1  ;;  %v453_v31 = vrot.slane %v4483_v15, 1 }
  0x26   : > { %v3941_v32 = vpack.i.bf16 %v4455_v53, %v4452_v52  ;;  %v438_v36 = vrot.slane %v4497_v22, 1  ;;  %v454_v37 = vrot.slane %v4500_v26, 1  ;;  %v3946_v48 = vpack.i.bf16 %v4483_v15, %v4480_v14 }
  0x27   : > { %3872 = vrot.lane.b32.xlu0 %v3871_v56, %s4188_s8  ;;  %3867 = vrot.lane.b32.xlu1 %v3866_v59, %s4187_s30  ;;  %v3921_v56 = vpack.i.bf16 %v4416_v30, %v4413_v28  ;;  %v4465_v59 = vld [vmem:[%s5864_s1] sm:$0x3f]   ;;  %v486_v38 = vsel %vm456_vm0, %v453_v31, %v437_v27  ;;  %v470_v49 = vsel %vm456_vm0, %v437_v27, %v453_v31  ;;  %v340_v27 = vrot.slane %v4265_v7, 7 }
  0x28   : > { %v520_v50 = vsel %vm286_vm1, 0.0, %v486_v38  ;;  %v471_v61 = vsel %vm456_vm0, %v438_v36, %v454_v37  ;;  %v324_v31 = vrot.slane %v4260_v5, 7 }
  0x2a   : > { %v373_v5 = vsel %vm355_vm4, %v340_v27, %v324_v31 }
  0x2b   : > { %3882 = vrot.lane.b32.xlu0 %v3881_v10, %s4187_s30  ;;  %3877 = vrot.lane.b32.xlu1 %v3876_v12, %s4188_s8  ;;  %v972_v10 = vsel %vm970_vm2, %v4141_v51, 0  ;;  %v484_v12 = vsel %vm456_vm0, %v451_v55, %v435_v54  ;;  %v487_v51 = vsel %vm456_vm0, %v454_v37, %v438_v36  ;;  %v357_v37 = vsel %vm355_vm4, %v324_v31, %v340_v27 }
  0x2c   : > { %3473 = vmatpush3.bf16.msra.mxu0 %v972_v10  ;;  %v522_v62 = vsel %vm286_vm1, 0.0, %v487_v51  ;;  %v394_v51 = vsel %vm283_vm5, 0.0, %v373_v5  ;;  %v344_v5 = vrot.slane %v4329_v40, 7 }
  0x2d   : > { %3805 = vmatprep.subr.msk.bf16.mxu0 %vm970_vm2, %v4465_v59 }
  0x2f   : > { %3892 = vrot.lane.b32.xlu0 %v3891_v18, %s4188_s8  ;;  %3887 = vrot.lane.b32.xlu1 %v3886_v21, %s4187_s30  ;;  %v516_v18 = vsel %vm286_vm1, 0.0, %v484_v12  ;;  %v485_v21 = vsel %vm456_vm0, %v452_v9, %v436_v6 }
  0x30   : > { %v518_v35 = vsel %vm286_vm1, 0.0, %v485_v21  ;;  %v323_v21 = vrot.slane %v4254_v3, 7 }
  0x33   : > { %3902 = vrot.lane.b32.xlu0 %v3901_v33, %s4187_s30  ;;  %3897 = vrot.lane.b32.xlu1 %v3896_v34, %s4188_s8  ;;  %v3936_v33 = vpack.i.bf16 %v516_v18, %v468_v17  ;;  %v469_v34 = vsel %vm456_vm0, %v436_v6, %v452_v9  ;;  %v3971_v9 = vpack.i.bf16 %v522_v62, %v471_v61  ;;  %v4189_v17 = vmov 0  }
  0x34   : > { %v3951_v41 = vpack.i.bf16 %v518_v35, %v469_v34  ;;  %320 = vst.msk [vmem:[#allocation2] sm:$0xff] %vm319_vm3, %v4189_v17  ;;  %322 = vst.msk [vmem:[#allocation2 + $0x88] sm:$0xff] %vm319_vm3, %v4189_v17  ;;  %v339_v18 = vrot.slane %v4257_v4, 7  ;;  %v325_v34 = vrot.slane %v4269_v8, 7 }
  0x36   : > { %v356_v3 = vsel %vm355_vm4, %v323_v21, %v339_v18 }
  0x37   : > { %3912 = vrot.lane.b32.xlu0 %v3911_v42, %s4188_s8  ;;  %3907 = vrot.lane.b32.xlu1 %v3906_v47, %s4187_s30  ;;  %v4518_v42 = vld [vmem:[%s4251_s29 + $0xf0] sm:$0xff]  ;;  %v4521_v47 = vld [vmem:[%s4251_s29 + $0xf8] sm:$0xff] }
  0x38   : > { %v439_v54 = vrot.slane %v4518_v42, 1  ;;  %v455_v55 = vrot.slane %v4521_v47, 1  ;;  %v3966_v10 = vpack.i.bf16 %v4521_v47, %v4518_v42 }
  0x3a   : > { %v488_v6 = vsel %vm456_vm0, %v455_v55, %v439_v54  ;;  %v472_v12 = vsel %vm456_vm0, %v439_v54, %v455_v55 }
  0x3b   : > { %3922 = vrot.lane.b32.xlu0 %v3921_v56, %s4187_s30  ;;  %3917 = vrot.lane.b32.xlu1 %v3916_v60, %s4188_s8  ;;  %v3961_v56 = vpack.i.bf16 %v4500_v26, %v4497_v22  ;;  %v3956_v60 = vpack.i.bf16 %v520_v50, %v470_v49 }
  0x3f   : > { %3932 = vrot.lane.b32.xlu0 %v3931_v13, %s4188_s8  ;;  %3927 = vrot.lane.b32.xlu1 %v3926_v16, %s4187_s30  ;;  %v524_v13 = vsel %vm286_vm1, 0.0, %v488_v6 }
  0x40   : > { %v3976_v16 = vpack.i.bf16 %v524_v13, %v472_v12 }
  0x43   : > { %3942 = vrot.lane.b32.xlu0 %v3941_v32, %s4187_s30  ;;  %3937 = vrot.lane.b32.xlu1 %v3936_v33, %s4188_s8  ;;  %v372_v32 = vsel %vm355_vm4, %v339_v18, %v323_v21  ;;  %v341_v33 = vrot.slane %v4275_v11, 7  ;;  %v327_v21 = vrot.slane %v4301_v25, 7 }
  0x44   : > { %v392_v7 = vsel %vm283_vm5, 0.0, %v372_v32 }
  0x45   : > { %v374_v8 = vsel %vm355_vm4, %v341_v33, %v325_v34  ;;  %v358_v61 = vsel %vm355_vm4, %v325_v34, %v341_v33 }
  0x47   : > { %3952 = vrot.lane.b32.xlu0 %v3951_v41, %s4188_s8  ;;  %3947 = vrot.lane.b32.xlu1 %v3946_v48, %s4187_s30 }
  0x4b   : > { %3962 = vrot.lane.b32.xlu0 %v3961_v56, %s4187_s30  ;;  %3957 = vrot.lane.b32.xlu1 %v3956_v60, %s4188_s8  ;;  %v342_v56 = vrot.slane %v4298_v24, 7  ;;  %v326_v60 = vrot.slane %v4295_v23, 7  ;;  %v343_v23 = vrot.slane %v4311_v29, 7 }
  0x4d   : > { %v375_v29 = vsel %vm355_vm4, %v342_v56, %v326_v60 }
  0x4e   : > { %v398_v40 = vsel %vm283_vm5, 0.0, %v375_v29  ;;  %v330_v29 = vrot.slane %v4362_v57, 7  ;;  %v347_v57 = vrot.slane %v4380_v0, 7 }
  0x4f   : > { %3972 = vrot.lane.b32.xlu0 %v3971_v9, %s4188_s8  ;;  %3967 = vrot.lane.b32.xlu1 %v3966_v10, %s4187_s30  ;;  %v396_v10 = vsel %vm283_vm5, 0.0, %v374_v8 }
  0x53   : > { %3977 = vrot.lane.b32.xlu1 %v3976_v16, %s4188_s8 }
  0x85   : > { %v3823_v35 = vpop.permute.xlu0 %3822 }
  0x86   : > { %v3825_v36 = vunpack.i.h.bf16 %v3823_v35  ;;  %v3824_v4 = vunpack.i.l.bf16 %v3823_v35 }
  0x88   : > { %v782_v11 = vsel %vm781_vm6, %v392_v7, %v3824_v4  ;;  %v783_v41 = vsel %vm781_vm6, %v356_v3, %v3825_v36 }
  0x89   : > { %v3828_v38 = vpop.permute.xlu0 %3827  ;;  %v3838_v50 = vpop.permute.xlu1 %3837 }
  0x8a   : > { %v3830_v48 = vunpack.i.h.bf16 %v3828_v38  ;;  %v3829_v49 = vunpack.i.l.bf16 %v3828_v38  ;;  %v3840_v54 = vunpack.i.h.bf16 %v3838_v50  ;;  %v3839_v55 = vunpack.i.l.bf16 %v3838_v50 }
  0x8b   : > { %v376_v38 = vsel %vm355_vm4, %v343_v23, %v327_v21  ;;  %v359_v50 = vsel %vm355_vm4, %v326_v60, %v342_v56 }
  0x8c   : > { %v785_v62 = vsel %vm781_vm6, %v357_v37, %v3830_v48  ;;  %v815_v6 = vsel %vm814_vm7, %v782_v11, %v3839_v55  ;;  %v816_v9 = vsel %vm814_vm7, %v783_v41, %v3840_v54  ;;  %v784_v13 = vsel %vm781_vm6, %v394_v51, %v3829_v49 }
  0x8d   : > { %v3833_v12 = vpop.permute.xlu0 %3832  ;;  %v847_v16 = vpack.c.bf16 %v816_v9, %v815_v6  ;;  %v3843_v18 = vpop.permute.xlu1 %3842  ;;  %v328_v37 = vrot.slane %v4326_v39, 7  ;;  %v360_v39 = vsel %vm355_vm4, %v327_v21, %v343_v23  ;;  %v400_v54 = vsel %vm283_vm5, 0.0, %v376_v38 }
  0x8e   : > { %v3835_v17 = vunpack.i.h.bf16 %v3833_v12  ;;  %v3834_v24 = vunpack.i.l.bf16 %v3833_v12  ;;  %v3845_v27 = vunpack.i.h.bf16 %v3843_v18  ;;  %v3844_v31 = vunpack.i.l.bf16 %v3843_v18 }
  0x8f   : > { %864 = vst.msk [vmem:[#allocation2 + $0x8] sm:$0xff] %vm319_vm3, %v847_v16  ;;  %v345_v6 = vrot.slane %v4344_v46, 7  ;;  %v329_v9 = vrot.slane %v4341_v45, 7  ;;  %v377_v16 = vsel %vm355_vm4, %v344_v5, %v328_v37 }
  0x90   : > { %v787_v32 = vsel %vm781_vm6, %v358_v61, %v3835_v17  ;;  %v786_v33 = vsel %vm781_vm6, %v396_v10, %v3834_v24  ;;  %v818_v34 = vsel %vm814_vm7, %v785_v62, %v3845_v27  ;;  %v817_v35 = vsel %vm814_vm7, %v784_v13, %v3844_v31 }
  0x91   : > { %v3853_v36 = vpop.permute.xlu0 %3852  ;;  %v848_v4 = vpack.c.bf16 %v818_v34, %v817_v35  ;;  %v3848_v25 = vpop.permute.xlu1 %3847  ;;  %v346_v34 = vrot.slane %v4365_v58, 7  ;;  %v361_v58 = vsel %vm355_vm4, %v328_v37, %v344_v5  ;;  %v402_v38 = vsel %vm283_vm5, 0.0, %v377_v16 }
  0x92   : > { %v3855_v3 = vunpack.i.h.bf16 %v3853_v36  ;;  %v3854_v7 = vunpack.i.l.bf16 %v3853_v36  ;;  %v3850_v41 = vunpack.i.h.bf16 %v3848_v25  ;;  %v3849_v48 = vunpack.i.l.bf16 %v3848_v25 }
  0x93   : > { %865 = vst.msk [vmem:[#allocation2 + $0x10] sm:$0xff] %vm319_vm3, %v848_v4  ;;  %v378_v36 = vsel %vm355_vm4, %v345_v6, %v329_v9  ;;  %v331_v5 = vrot.slane %v4377_v63, 7 }
  0x94   : > { %v819_v8 = vsel %vm814_vm7, %v786_v33, %v3854_v7  ;;  %v820_v11 = vsel %vm814_vm7, %v787_v32, %v3855_v3  ;;  %v789_v12 = vsel %vm781_vm6, %v359_v50, %v3850_v41  ;;  %v788_v13 = vsel %vm781_vm6, %v398_v40, %v3849_v48  ;;  %v4635_v33 = vld [vmem:[%s5864_s1 + $0x10] sm:$0x3f]  }
  0x95   : > { %v849_v49 = vpack.c.bf16 %v820_v11, %v819_v8  ;;  %v3863_v51 = vpop.permute.xlu0 %3862  ;;  %v3858_v62 = vpop.permute.xlu1 %3857  ;;  %v1189_v32 = vsel %vm970_vm2, %v4465_v59, 0  ;;  %v362_v11 = vsel %vm355_vm4, %v329_v9, %v345_v6  ;;  %v404_v41 = vsel %vm283_vm5, 0.0, %v378_v36 }
  0x96   : > { %v3865_v55 = vunpack.i.h.bf16 %v3863_v51  ;;  %v3864_v61 = vunpack.i.l.bf16 %v3863_v51  ;;  %v3860_v56 = vunpack.i.h.bf16 %v3858_v62  ;;  %v3859_v60 = vunpack.i.l.bf16 %v3858_v62  ;;  %v4618_v10 = vld [vmem:[#allocation2 + $0x8] sm:$0xff] }
  0x97   : > { %866 = vst.msk [vmem:[#allocation2 + $0x18] sm:$0xff] %vm319_vm3, %v849_v49  ;;  %3474 = vmatprep.mubr.msk.bf16.mxu0 %vm319_vm3, %v4618_v10 }
  0x98   : > { %v791_v46 = vsel %vm781_vm6, %v360_v39, %v3865_v55  ;;  %v790_v45 = vsel %vm781_vm6, %v400_v54, %v3864_v61  ;;  %v821_v17 = vsel %vm814_vm7, %v788_v13, %v3859_v60  ;;  %v822_v24 = vsel %vm814_vm7, %v789_v12, %v3860_v56 }
  0x99   : > { %v3873_v18 = vpop.permute.xlu0 %3872  ;;  %v850_v23 = vpack.c.bf16 %v822_v24, %v821_v17  ;;  %v3868_v31 = vpop.permute.xlu1 %3867  ;;  %v379_v60 = vsel %vm355_vm4, %v346_v34, %v330_v29  ;;  %v348_v13 = vrot.slane %v4401_v20, 7  ;;  %v363_v20 = vsel %vm355_vm4, %v330_v29, %v346_v34 }
  0x9a   : > { %v3875_v21 = vunpack.i.h.bf16 %v3873_v18  ;;  %v3874_v27 = vunpack.i.l.bf16 %v3873_v18  ;;  %v4638_v35 = vld [vmem:[#allocation2 + $0x10] sm:$0xff]  ;;  %v3870_v7 = vunpack.i.h.bf16 %v3868_v31  ;;  %v3869_v59 = vunpack.i.l.bf16 %v3868_v31 }
  0x9b   : > { %867 = vst.msk [vmem:[#allocation2 + $0x20] sm:$0xff] %vm319_vm3, %v850_v23  ;;  %3475 = vmatmul.mubr.msk.bf16.vlgmr.msra.gmra.mrb[0].mxu0 %vm319_vm3, %v4638_v35  ;;  %v332_v23 = vrot.slane %v4398_v19, 7  ;;  %v349_v19 = vrot.slane %v4416_v30, 7 }
  0x9c   : > { %v823_v4 = vsel %vm814_vm7, %v790_v45, %v3874_v27  ;;  %v824_v3 = vsel %vm814_vm7, %v791_v46, %v3875_v21  ;;  %3507 = vmatpush3.bf16.msra.mxu0 %v1189_v32  ;;  %v793_v39 = vsel %vm781_vm6, %v361_v58, %v3870_v7  ;;  %v792_v54 = vsel %vm781_vm6, %v402_v38, %v3869_v59 }
  0x9d   : > { %v851_v25 = vpack.c.bf16 %v824_v3, %v823_v4  ;;  %v3883_v8 = vpop.permute.xlu0 %3882  ;;  %v3878_v50 = vpop.permute.xlu1 %3877  ;;  %3806 = vmatprep.subr.msk.bf16.mxu0 %vm970_vm2, %v4635_v33  ;;  %v380_v46 = vsel %vm355_vm4, %v347_v57, %v331_v5  ;;  %v406_v27 = vsel %vm283_vm5, 0.0, %v379_v60  ;;  %v364_v32 = vsel %vm355_vm4, %v331_v5, %v347_v57 }
  0x9e   : > { %v3885_v48 = vunpack.i.h.bf16 %v3883_v8  ;;  %v3884_v49 = vunpack.i.l.bf16 %v3883_v8  ;;  %v4656_v40 = vld [vmem:[#allocation2 + $0x18] sm:$0xff]  ;;  %v3880_v37 = vunpack.i.h.bf16 %v3878_v50  ;;  %v3879_v51 = vunpack.i.l.bf16 %v3878_v50 }
  0x9f   : > { %868 = vst.msk [vmem:[#allocation2 + $0x28] sm:$0xff] %vm319_vm3, %v851_v25  ;;  %3478 = vmatprep.mubr.msk.bf16.mxu0 %vm319_vm3, %v4656_v40  ;;  %v408_v36 = vsel %vm283_vm5, 0.0, %v380_v46  ;;  %v333_v25 = vrot.slane %v4413_v28, 7  ;;  %v381_v57 = vsel %vm355_vm4, %v348_v13, %v332_v23 }
  0xa0   : > { %v795_v55 = vsel %vm781_vm6, %v362_v11, %v3885_v48  ;;  %v794_v61 = vsel %vm781_vm6, %v404_v41, %v3884_v49  ;;  %v825_v62 = vsel %vm814_vm7, %v792_v54, %v3879_v51  ;;  %v826_v0 = vsel %vm814_vm7, %v793_v39, %v3880_v37 }
  0xa1   : > { %v3893_v63 = vpop.permute.xlu0 %3892  ;;  %v852_v6 = vpack.c.bf16 %v826_v0, %v825_v62  ;;  %v3888_v12 = vpop.permute.xlu1 %3887  ;;  %v350_v37 = vrot.slane %v4437_v44, 7  ;;  %v382_v39 = vsel %vm355_vm4, %v349_v19, %v333_v25  ;;  %v334_v0 = vrot.slane %v4434_v43, 7 }
  0xa2   : > { %v3895_v9 = vunpack.i.h.bf16 %v3893_v63  ;;  %v3894_v56 = vunpack.i.l.bf16 %v3893_v63  ;;  %v4674_v16 = vld [vmem:[#allocation2 + $0x20] sm:$0xff]  ;;  %v3890_v24 = vunpack.i.h.bf16 %v3888_v12  ;;  %v3889_v18 = vunpack.i.l.bf16 %v3888_v12 }
  0xa3   : > { %869 = vst.msk [vmem:[#allocation2 + $0x30] sm:$0xff] %vm319_vm3, %v852_v6  ;;  %3479 = vmatmul.mubr.msk.bf16.gmra.mrb[4].mxu0 %vm319_vm3, %v4674_v16  ;;  %v365_v44 = vsel %vm355_vm4, %v332_v23, %v348_v13  ;;  %v410_v6 = vsel %vm283_vm5, 0.0, %v381_v57  ;;  %v412_v60 = vsel %vm283_vm5, 0.0, %v382_v39  ;;  %v351_v43 = vrot.slane %v4455_v53, 7 }
  0xa4   : > { %v827_v45 = vsel %vm814_vm7, %v794_v61, %v3894_v56  ;;  %v828_v17 = vsel %vm814_vm7, %v795_v55, %v3895_v9  ;;  %v797_v58 = vsel %vm781_vm6, %v363_v20, %v3890_v24  ;;  %v796_v38 = vsel %vm781_vm6, %v406_v27, %v3889_v18 }
  0xa5   : > { %v853_v21 = vpack.c.bf16 %v828_v17, %v827_v45  ;;  %v3903_v31 = vpop.permute.xlu0 %3902  ;;  %v3898_v7 = vpop.permute.xlu1 %3897  ;;  %v366_v56 = vsel %vm355_vm4, %v333_v25, %v349_v19  ;;  %v335_v24 = vrot.slane %v4452_v52, 7  ;;  %v352_v19 = vrot.slane %v4483_v15, 7 }
  0xa6   : > { %v3905_v4 = vunpack.i.h.bf16 %v3903_v31  ;;  %v3904_v3 = vunpack.i.l.bf16 %v3903_v31  ;;  %v4692_v59 = vld [vmem:[#allocation2 + $0x28] sm:$0xff]  ;;  %v3900_v34 = vunpack.i.h.bf16 %v3898_v7  ;;  %v3899_v29 = vunpack.i.l.bf16 %v3898_v7 }
  0xa7   : > { %870 = vst.msk [vmem:[#allocation2 + $0x38] sm:$0xff] %vm319_vm3, %v853_v21  ;;  %3482 = vmatprep.mubr.msk.bf16.mxu0 %vm319_vm3, %v4692_v59  ;;  %v367_v15 = vsel %vm355_vm4, %v334_v0, %v350_v37 }
  0xa8   : > { %v799_v8 = vsel %vm781_vm6, %v364_v32, %v3905_v4  ;;  %v798_v11 = vsel %vm781_vm6, %v408_v36, %v3904_v3  ;;  %v829_v41 = vsel %vm814_vm7, %v796_v38, %v3899_v29  ;;  %v830_v30 = vsel %vm814_vm7, %v797_v58, %v3900_v34 }
  0xa9   : > { %v3913_v28 = vpop.permute.xlu0 %3912  ;;  %v854_v48 = vpack.c.bf16 %v830_v30, %v829_v41  ;;  %v3908_v5 = vpop.permute.xlu1 %3907  ;;  %v383_v3 = vsel %vm355_vm4, %v350_v37, %v334_v0  ;;  %v384_v34 = vsel %vm355_vm4, %v351_v43, %v335_v24 }
  0xaa   : > { %v3915_v49 = vunpack.i.h.bf16 %v3913_v28  ;;  %v3914_v50 = vunpack.i.l.bf16 %v3913_v28  ;;  %v4708_v51 = vld [vmem:[#allocation2 + $0x30] sm:$0xff]  ;;  %v3910_v61 = vunpack.i.h.bf16 %v3908_v5  ;;  %v3909_v62 = vunpack.i.l.bf16 %v3908_v5 }
  0xab   : > { %871 = vst.msk [vmem:[#allocation2 + $0x40] sm:$0xff] %vm319_vm3, %v854_v48  ;;  %3483 = vmatmul.mubr.msk.bf16.gmra.mrb[8].mxu0 %vm319_vm3, %v4708_v51  ;;  %v414_v30 = vsel %vm283_vm5, 0.0, %v383_v3  ;;  %v368_v48 = vsel %vm355_vm4, %v335_v24, %v351_v43 }
  0xac   : > { %v831_v54 = vsel %vm814_vm7, %v798_v11, %v3914_v50  ;;  %v832_v55 = vsel %vm814_vm7, %v799_v8, %v3915_v49  ;;  %v801_v23 = vsel %vm781_vm6, %v365_v44, %v3910_v61  ;;  %v800_v21 = vsel %vm781_vm6, %v410_v6, %v3909_v62 }
  0xad   : > { %v855_v63 = vpack.c.bf16 %v832_v55, %v831_v54  ;;  %v3923_v9 = vpop.permute.xlu0 %3922  ;;  %v3918_v45 = vpop.permute.xlu1 %3917  ;;  %v336_v11 = vrot.slane %v4480_v14, 7  ;;  %v416_v49 = vsel %vm283_vm5, 0.0, %v384_v34  ;;  %v353_v14 = vrot.slane %v4500_v26, 7 }
  0xae   : > { %v3925_v12 = vunpack.i.h.bf16 %v3923_v9  ;;  %v3924_v46 = vunpack.i.l.bf16 %v3923_v9  ;;  %v4726_v17 = vld [vmem:[#allocation2 + $0x38] sm:$0xff]  ;;  %v3920_v13 = vunpack.i.h.bf16 %v3918_v45  ;;  %v3919_v18 = vunpack.i.l.bf16 %v3918_v45 }
  0xaf   : > { %872 = vst.msk [vmem:[#allocation2 + $0x48] sm:$0xff] %vm319_vm3, %v855_v63  ;;  %3486 = vmatprep.mubr.msk.bf16.mxu0 %vm319_vm3, %v4726_v17  ;;  %v337_v54 = vrot.slane %v4497_v22, 7 }
  0xb0   : > { %v803_v20 = vsel %vm781_vm6, %v366_v56, %v3925_v12  ;;  %v802_v27 = vsel %vm781_vm6, %v412_v60, %v3924_v46  ;;  %v833_v31 = vsel %vm814_vm7, %v800_v21, %v3919_v18  ;;  %v834_v53 = vsel %vm814_vm7, %v801_v23, %v3920_v13 }
  0xb1   : > { %v3933_v52 = vpop.permute.xlu0 %3932  ;;  %v856_v32 = vpack.c.bf16 %v834_v53, %v833_v31  ;;  %v3928_v7 = vpop.permute.xlu1 %3927  ;;  %v385_v60 = vsel %vm355_vm4, %v352_v19, %v336_v11  ;;  %v354_v46 = vrot.slane %v4521_v47, 7  ;;  %v386_v43 = vsel %vm355_vm4, %v353_v14, %v337_v54 }
  0xb2   : > { %v3935_v36 = vunpack.i.h.bf16 %v3933_v52  ;;  %v3934_v4 = vunpack.i.l.bf16 %v3933_v52  ;;  %v4742_v25 = vld [vmem:[#allocation2 + $0x40] sm:$0xff]  ;;  %v3930_v38 = vunpack.i.h.bf16 %v3928_v7  ;;  %v3929_v8 = vunpack.i.l.bf16 %v3928_v7 }
  0xb3   : > { %873 = vst.msk [vmem:[#allocation2 + $0x50] sm:$0xff] %vm319_vm3, %v856_v32  ;;  %3487 = vmatmul.mubr.msk.bf16.gmra.mrb[12].mxu0 %vm319_vm3, %v4742_v25  ;;  %v338_v21 = vrot.slane %v4518_v42, 7  ;;  %v369_v47 = vsel %vm355_vm4, %v336_v11, %v352_v19  ;;  %v370_v53 = vsel %vm355_vm4, %v337_v54, %v353_v14  ;;  %v420_v52 = vsel %vm283_vm5, 0.0, %v386_v43 }
  0xb4   : > { %v835_v29 = vsel %vm814_vm7, %v802_v27, %v3934_v4  ;;  %v836_v58 = vsel %vm814_vm7, %v803_v20, %v3935_v36  ;;  %v805_v61 = vsel %vm781_vm6, %v367_v15, %v3930_v38  ;;  %v804_v62 = vsel %vm781_vm6, %v414_v30, %v3929_v8 }
  0xb5   : > { %v857_v41 = vpack.c.bf16 %v836_v58, %v835_v29  ;;  %v3943_v28 = vpop.permute.xlu0 %3942  ;;  %v3938_v5 = vpop.permute.xlu1 %3937  ;;  %v418_v27 = vsel %vm283_vm5, 0.0, %v385_v60  ;;  %v1426_v43 = vsel %vm970_vm2, %v4635_v33, 0  ;;  %v4883_v33 = vld [vmem:[%s5865_s2] ss:$0 sm:$0xff] }
  0xb6   : > { %v3945_v50 = vunpack.i.h.bf16 %v3943_v28  ;;  %v3944_v57 = vunpack.i.l.bf16 %v3943_v28  ;;  %v4760_v39 = vld [vmem:[#allocation2 + $0x48] sm:$0xff]  ;;  %v3940_v37 = vunpack.i.h.bf16 %v3938_v5  ;;  %v3939_v55 = vunpack.i.l.bf16 %v3938_v5 }
  0xb7   : > { %874 = vst.msk [vmem:[#allocation2 + $0x58] sm:$0xff] %vm319_vm3, %v857_v41  ;;  %3490 = vmatprep.mubr.msk.bf16.mxu0 %vm319_vm3, %v4760_v39  ;;  %v387_v28 = vsel %vm355_vm4, %v354_v46, %v338_v21 }
  0xb8   : > { %v807_v0 = vsel %vm781_vm6, %v368_v48, %v3945_v50  ;;  %v806_v63 = vsel %vm781_vm6, %v416_v49, %v3944_v57  ;;  %v837_v44 = vsel %vm814_vm7, %v804_v62, %v3939_v55  ;;  %v838_v26 = vsel %vm814_vm7, %v805_v61, %v3940_v37 }
  0xb9   : > { %v3953_v22 = vpop.permute.xlu0 %3952  ;;  %v858_v6 = vpack.c.bf16 %v838_v26, %v837_v44  ;;  %v3948_v12 = vpop.permute.xlu1 %3947  ;;  %v371_v37 = vsel %vm355_vm4, %v338_v21, %v354_v46  ;;  %v422_v55 = vsel %vm283_vm5, 0.0, %v387_v28 }
  0xba   : > { %v3955_v9 = vunpack.i.h.bf16 %v3953_v22  ;;  %v3954_v56 = vunpack.i.l.bf16 %v3953_v22  ;;  %v4776_v45 = vld [vmem:[#allocation2 + $0x50] sm:$0xff]  ;;  %v3950_v18 = vunpack.i.h.bf16 %v3948_v12  ;;  %v3949_v23 = vunpack.i.l.bf16 %v3948_v12  ;;  %v880_v12 = vld [vmem:[#allocation2] sm:$0xff] }
  0xbb   : > { %875 = vst.msk [vmem:[#allocation2 + $0x60] sm:$0xff] %vm319_vm3, %v858_v6  ;;  %3491 = vmatmul.mubr.msk.bf16.gmra.mrb[16].mxu0 %vm319_vm3, %v4776_v45 }
  0xbc   : > { %v839_v24 = vsel %vm814_vm7, %v806_v63, %v3954_v56  ;;  %v840_v13 = vsel %vm814_vm7, %v807_v0, %v3955_v9  ;;  %v809_v19 = vsel %vm781_vm6, %v369_v47, %v3950_v18  ;;  %v808_v34 = vsel %vm781_vm6, %v418_v27, %v3949_v23 }
  0xbd   : > { %v859_v20 = vpack.c.bf16 %v840_v13, %v839_v24  ;;  %v3963_v31 = vpop.permute.xlu0 %3962  ;;  %v3958_v4 = vpop.permute.xlu1 %3957 }
  0xbe   : > { %v3965_v32 = vunpack.i.h.bf16 %v3963_v31  ;;  %v3964_v36 = vunpack.i.l.bf16 %v3963_v31  ;;  %v4794_v3 = vld [vmem:[#allocation2 + $0x58] sm:$0xff]  ;;  %v3960_v42 = vunpack.i.h.bf16 %v3958_v4  ;;  %v3959_v7 = vunpack.i.l.bf16 %v3958_v4 }
  0xbf   : > { %876 = vst.msk [vmem:[#allocation2 + $0x68] sm:$0xff] %vm319_vm3, %v859_v20  ;;  %3494 = vmatprep.mubr.msk.bf16.mxu0 %vm319_vm3, %v4794_v3 }
  0xc0   : > { %v811_v29 = vsel %vm781_vm6, %v370_v53, %v3965_v32  ;;  %v810_v58 = vsel %vm781_vm6, %v420_v52, %v3964_v36  ;;  %v841_v38 = vsel %vm814_vm7, %v808_v34, %v3959_v7  ;;  %v842_v8 = vsel %vm814_vm7, %v809_v19, %v3960_v42 }
  0xc1   : > { %v3973_v11 = vpop.permute.xlu0 %3972  ;;  %v860_v41 = vpack.c.bf16 %v842_v8, %v841_v38  ;;  %v3968_v48 = vpop.permute.xlu1 %3967 }
  0xc2   : > { %v3975_v15 = vunpack.i.h.bf16 %v3973_v11  ;;  %v3974_v30 = vunpack.i.l.bf16 %v3973_v11  ;;  %v909_v49 = vld [vmem:[#allocation2 + $0x60] sm:$0xff]  ;;  %v3970_v5 = vunpack.i.h.bf16 %v3968_v48  ;;  %v3969_v14 = vunpack.i.l.bf16 %v3968_v48 }
  0xc3   : > { %877 = vst.msk [vmem:[#allocation2 + $0x70] sm:$0xff] %vm319_vm3, %v860_v41  ;;  %3495 = vmatmul.mubr.msk.bf16.gmra.mrb[20].mxu0 %vm319_vm3, %v909_v49 }
  0xc4   : > { %v843_v50 = vsel %vm814_vm7, %v810_v58, %v3974_v30  ;;  %v844_v57 = vsel %vm814_vm7, %v811_v29, %v3975_v15  ;;  %v813_v44 = vsel %vm781_vm6, %v371_v37, %v3970_v5  ;;  %v812_v26 = vsel %vm781_vm6, %v422_v55, %v3969_v14 }
  0xc5   : > { %v861_v54 = vpack.c.bf16 %v844_v57, %v843_v50  ;;  %v3978_v61 = vpop.permute.xlu1 %3977 }
  0xc6   : > { %v910_v62 = vld [vmem:[#allocation2 + $0x68] sm:$0xff]  ;;  %v3980_v0 = vunpack.i.h.bf16 %v3978_v61  ;;  %v3979_v63 = vunpack.i.l.bf16 %v3978_v61 }
  0xc7   : > { %878 = vst.msk [vmem:[#allocation2 + $0x78] sm:$0xff] %vm319_vm3, %v861_v54  ;;  %3498 = vmatprep.mubr.msk.bf16.mxu0 %vm319_vm3, %v910_v62 }
  0xc8   : > { %v845_v22 = vsel %vm814_vm7, %v812_v26, %v3979_v63  ;;  %v846_v6 = vsel %vm814_vm7, %v813_v44, %v3980_v0 }
  0xc9   : > { %v862_v9 = vpack.c.bf16 %v846_v6, %v845_v22 }
  0xca   : > { %v911_v56 = vld [vmem:[#allocation2 + $0x70] sm:$0xff] }
  0xcb   : > { %879 = vst.msk [vmem:[#allocation2 + $0x80] sm:$0xff] %vm319_vm3, %v862_v9  ;;  %3499 = vmatmul.mubr.msk.bf16.gmra.mrb[24].mxu0 %vm319_vm3, %v911_v56 }
  0xce   : > { %v912_v60 = vld [vmem:[#allocation2 + $0x78] sm:$0xff] }
  0xcf   : > { %3502 = vmatprep.mubr.msk.bf16.mxu0 %vm319_vm3, %v912_v60 }
  0xd2   : > { %v913_v46 = vld [vmem:[#allocation2 + $0x80] sm:$0xff] }
  0xd3   : > { %3503 = vmatmul.mubr.msk.bf16.gmra.mrb[28].mxu0 %vm319_vm3, %v913_v46 }
  0xd4   : > { %3508 = vmatprep.mubr.msk.bf16.mxu0 %vm319_vm3, %v880_v12 }
  0xdb   : > { %3509 = vmatmul.mubr.msk.bf16.vlgmr.msra.gmra.mrb[0].mxu0 %vm319_vm3, %v4618_v10  ;;  %v1368_v10 = vld [vmem:[#allocation2 + $0x88] sm:$0xff] }
  0xdc   : > { %3541 = vmatpush3.bf16.msra.mxu0 %v1426_v43  ;;  %3512 = vmatprep.mubr.msk.bf16.mxu0 %vm319_vm3, %v4638_v35 }
  0xe3   : > { %3513 = vmatmul.mubr.msk.bf16.gmra.mrb[4].mxu0 %vm319_vm3, %v4656_v40 }
  0xe4   : > { %3516 = vmatprep.mubr.msk.bf16.mxu0 %vm319_vm3, %v4674_v16 }
  0xeb   : > { %3517 = vmatmul.mubr.msk.bf16.gmra.mrb[8].mxu0 %vm319_vm3, %v4692_v59 }
  0xec   : > { %3520 = vmatprep.mubr.msk.bf16.mxu0 %vm319_vm3, %v4708_v51 }
  0xf3   : > { %3521 = vmatmul.mubr.msk.bf16.gmra.mrb[12].mxu0 %vm319_vm3, %v4726_v17 }
  0xf4   : > { %3524 = vmatprep.mubr.msk.bf16.mxu0 %vm319_vm3, %v4742_v25 }
  0xfb   : > { %3525 = vmatmul.mubr.msk.bf16.gmra.mrb[16].mxu0 %vm319_vm3, %v4760_v39 }
  0xfc   : > { %3528 = vmatprep.mubr.msk.bf16.mxu0 %vm319_vm3, %v4776_v45 }
 0x103   : > { %3529 = vmatmul.mubr.msk.bf16.gmra.mrb[20].mxu0 %vm319_vm3, %v4794_v3 }
 0x104   : > { %3532 = vmatprep.mubr.msk.bf16.mxu0 %vm319_vm3, %v909_v49 }
 0x10b   : > { %3533 = vmatmul.mubr.msk.bf16.gmra.mrb[24].mxu0 %vm319_vm3, %v910_v62 }
 0x10c   : > { %3536 = vmatprep.mubr.msk.bf16.mxu0 %vm319_vm3, %v911_v56 }
 0x113   : > { %3537 = vmatmul.mubr.msk.bf16.gmra.mrb[28].mxu0 %vm319_vm3, %v912_v60 }
 0x114   : > { %3542 = vmatprep.mubr.msk.bf16.mxu0 %vm319_vm3, %v4638_v35 }
 0x11b   : > { %3543 = vmatmul.mubr.msk.bf16.vlgmr.msra.gmra.mrb[0].mxu0 %vm319_vm3, %v4656_v40  ;;  %v4888_v40 = vld [vmem:[%s5866_s3] ss:$0 sm:$0xff] }
 0x11c   : > { %3546 = vmatprep.mubr.msk.bf16.mxu0 %vm319_vm3, %v4674_v16 }
 0x123   : > { %3547 = vmatmul.mubr.msk.bf16.gmra.mrb[4].mxu0 %vm319_vm3, %v4692_v59 }
 0x124   : > { %3550 = vmatprep.mubr.msk.bf16.mxu0 %vm319_vm3, %v4708_v51 }
 0x12b   : > { %3551 = vmatmul.mubr.msk.bf16.gmra.mrb[8].mxu0 %vm319_vm3, %v4726_v17 }
 0x12c   : > { %3554 = vmatprep.mubr.msk.bf16.mxu0 %vm319_vm3, %v4742_v25 }
 0x133   : > { %3555 = vmatmul.mubr.msk.bf16.gmra.mrb[12].mxu0 %vm319_vm3, %v4760_v39 }
 0x134   : > { %3558 = vmatprep.mubr.msk.bf16.mxu0 %vm319_vm3, %v4776_v45 }
 0x13b   : > { %3559 = vmatmul.mubr.msk.bf16.gmra.mrb[16].mxu0 %vm319_vm3, %v4794_v3 }
 0x13c   : > { %3562 = vmatprep.mubr.msk.bf16.mxu0 %vm319_vm3, %v909_v49 }
 0x143   : > { %3563 = vmatmul.mubr.msk.bf16.gmra.mrb[20].mxu0 %vm319_vm3, %v910_v62 }
 0x144   : > { %3566 = vmatprep.mubr.msk.bf16.mxu0 %vm319_vm3, %v911_v56 }
 0x14b   : > { %3567 = vmatmul.mubr.msk.bf16.gmra.mrb[24].mxu0 %vm319_vm3, %v912_v60 }
 0x14c   : > { %3570 = vmatprep.mubr.msk.bf16.mxu0 %vm319_vm3, %v913_v46  ;;  %v4955_v46 = vld [vmem:[%s5867_s4 + $0x8] sm:$0x3f]  }
 0x14d   : > { %3807 = vmatprep.subr.msk.bf16.mxu1 %vm970_vm2, %v4955_v46 }
 0x153   : > { %3571 = vmatmul.mubr.msk.bf16.gmra.mrb[28].mxu0 %vm319_vm3, %v1368_v10 }
 0x1ee   : > { %v3544_v35 = vpop.f32.mrb[0].mxu0 }
 0x1ef   : > { %v1630_v16 = vmul.f32 %v3544_v35, %v4883_v33  ;;  %v1462_v59 = vpop.f32.mrb[1].mxu0 }
 0x1f0   : > { %v1628_v51 = vmul.f32 %v4883_v33, %v1462_v59  ;;  %v3545_v17 = vpop.f32.mrb[2].mxu0 }
 0x1f1   : > { %v1669_v25 = vadd.f32 %v4888_v40, %v1630_v16  ;;  %v1631_v39 = vmul.f32 %v3545_v17, %v4883_v33  ;;  %v1465_v45 = vpop.f32.mrb[3].mxu0 }
 0x1f2   : > { %v1667_v24 = vadd.f32 %v4888_v40, %v1628_v51  ;;  %v1629_v13 = vmul.f32 %v4883_v33, %v1465_v45 }
 0x1f3   : > { %v1701_v18 = vmax.f32 %v1669_v25, 0.0  ;;  %v1670_v23 = vadd.f32 %v4888_v40, %v1631_v39 }
 0x1f4   : > { %v4897_v21 = vmax.f32 %v1667_v24, 0.0  ;;  %v1668_v20 = vadd.f32 %v4888_v40, %v1629_v13 }
 0x1f5   : > { %v1702_v47 = vmax.f32 %v1670_v23, 0.0  ;;  %v1732_v27 = vrot.slane %v1701_v18, 7  ;;  %v1828_v31 = vrot.slane %v1701_v18, 1 }
 0x1f6   : > { %v4900_v53 = vmax.f32 %v1668_v20, 0.0  ;;  %v3548_v52 = vpop.f32.mrb[4].mxu0  ;;  %v1827_v32 = vrot.slane %v4897_v21, 1 }
 0x1f7   : > { %v1844_v36 = vrot.slane %v1702_v47, 1  ;;  %v1634_v4 = vmul.f32 %v3548_v52, %v4883_v33  ;;  %v1478_v3 = vpop.f32.mrb[5].mxu0  ;;  %v3981_v42 = vpack.i.bf16 %v1702_v47, %v1701_v18  ;;  %v1748_v7 = vrot.slane %v1702_v47, 7 }
 0x1f8   : > { %v1843_v19 = vrot.slane %v4900_v53, 1  ;;  %v1632_v34 = vmul.f32 %v4883_v33, %v1478_v3  ;;  %v3549_v29 = vpop.f32.mrb[6].mxu0  ;;  %v3986_v58 = vpack.i.bf16 %v4900_v53, %v4897_v21  ;;  %v1747_v63 = vrot.slane %v4900_v53, 7 }
 0x1f9   : > { %v1673_v38 = vadd.f32 %v4888_v40, %v1634_v4  ;;  %v1635_v8 = vmul.f32 %v3549_v29, %v4883_v33  ;;  %3982 = vrot.lane.b32.xlu1 %v3981_v42, %s4187_s30  ;;  %v1481_v11 = vpop.f32.mrb[7].mxu0  ;;  %v1860_v41 = vsel %vm456_vm0, %v1828_v31, %v1844_v36  ;;  %v1876_v15 = vsel %vm456_vm0, %v1844_v36, %v1828_v31 }
 0x1fa   : > { %v1671_v30 = vadd.f32 %v4888_v40, %v1632_v34  ;;  %v1633_v28 = vmul.f32 %v4883_v33, %v1481_v11  ;;  %3987 = vrot.lane.b32.xlu0 %v3986_v58, %s4187_s30  ;;  %v1894_v48 = vsel %vm286_vm1, 0.0, %v1876_v15  ;;  %v1859_v49 = vsel %vm456_vm0, %v1827_v32, %v1843_v19 }
 0x1fb   : > { %v4922_v50 = vmax.f32 %v1673_v38, 0.0  ;;  %v1674_v57 = vadd.f32 %v4888_v40, %v1635_v8  ;;  %v3991_v5 = vpack.i.bf16 %v1894_v48, %v1860_v41  ;;  %v1875_v14 = vsel %vm456_vm0, %v1843_v19, %v1827_v32 }
 0x1fc   : > { %v4927_v54 = vmax.f32 %v1671_v30, 0.0  ;;  %v1672_v37 = vadd.f32 %v4888_v40, %v1633_v28  ;;  %v1892_v55 = vsel %vm286_vm1, 0.0, %v1875_v14  ;;  %v4934_v61 = vsel %vm355_vm4, %v1732_v27, %v1748_v7 }
 0x1fd   : > { %v4936_v62 = vmax.f32 %v1674_v57, 0.0  ;;  %3992 = vrot.lane.b32.xlu1 %v3991_v5, %s4188_s8  ;;  %v3996_v0 = vpack.i.bf16 %v1892_v55, %v1859_v49  ;;  %v4944_v22 = vsel %vm355_vm4, %v1748_v7, %v1732_v27  ;;  %v1830_v6 = vrot.slane %v4922_v50, 1 }
 0x1fe   : > { %v4940_v44 = vmax.f32 %v1672_v37, 0.0  ;;  %v3552_v26 = vpop.f32.mrb[8].mxu0  ;;  %v1829_v43 = vrot.slane %v4927_v54, 1  ;;  %v1731_v52 = vrot.slane %v4897_v21, 7 }
 0x1ff   : > { %v1846_v9 = vrot.slane %v4936_v62, 1  ;;  %3997 = vrot.lane.b32.xlu0 %v3996_v0, %s4188_s8  ;;  %v1638_v56 = vmul.f32 %v3552_v26, %v4883_v33  ;;  %v1494_v60 = vpop.f32.mrb[9].mxu0  ;;  %v4001_v12 = vpack.i.bf16 %v4936_v62, %v4922_v50 }
 0x200   : > { %v1845_v10 = vrot.slane %v4940_v44, 1  ;;  %v1636_v35 = vmul.f32 %v4883_v33, %v1494_v60  ;;  %v3553_v16 = vpop.f32.mrb[10].mxu0  ;;  %v4006_v59 = vpack.i.bf16 %v4940_v44, %v4927_v54  ;;  %v4998_v21 = vsel %vm355_vm4, %v1731_v52, %v1747_v63 }
 0x201   : > { %v1677_v51 = vadd.f32 %v4888_v40, %v1638_v56  ;;  %v1639_v17 = vmul.f32 %v3553_v16, %v4883_v33  ;;  %4002 = vrot.lane.b32.xlu1 %v4001_v12, %s4187_s30  ;;  %v1497_v25 = vpop.f32.mrb[11].mxu0  ;;  %v1862_v39 = vsel %vm456_vm0, %v1830_v6, %v1846_v9  ;;  %v1878_v45 = vsel %vm456_vm0, %v1846_v9, %v1830_v6 }
 0x202   : > { %v1675_v24 = vadd.f32 %v4888_v40, %v1636_v35  ;;  %v1637_v13 = vmul.f32 %v4883_v33, %v1497_v25  ;;  %v1898_v18 = vsel %vm286_vm1, 0.0, %v1878_v45  ;;  %v1861_v23 = vsel %vm456_vm0, %v1829_v43, %v1845_v10 }
 0x203   : > { %v4977_v20 = vmax.f32 %v1677_v51, 0.0  ;;  %v1678_v47 = vadd.f32 %v4888_v40, %v1639_v17  ;;  %4007 = vrot.lane.b32.xlu0 %v4006_v59, %s4187_s30  ;;  %v4011_v27 = vpack.i.bf16 %v1898_v18, %v1862_v39  ;;  %v1877_v31 = vsel %vm456_vm0, %v1845_v10, %v1829_v43 }
 0x204   : > { %v4984_v32 = vmax.f32 %v1675_v24, 0.0  ;;  %v1676_v36 = vadd.f32 %v4888_v40, %v1637_v13  ;;  %v1896_v4 = vsel %vm286_vm1, 0.0, %v1877_v31  ;;  %v5039_v35 = vsel %vm355_vm4, %v1747_v63, %v1731_v52 }
 0x205   : > { %v4989_v3 = vmax.f32 %v1678_v47, 0.0  ;;  %4012 = vrot.lane.b32.xlu1 %v4011_v27, %s4188_s8  ;;  %v4016_v42 = vpack.i.bf16 %v1896_v4, %v1861_v23  ;;  %v1832_v34 = vrot.slane %v4977_v20, 1  ;;  %v1734_v51 = vrot.slane %v4922_v50, 7 }
 0x206   : > { %v4992_v7 = vmax.f32 %v1676_v36, 0.0  ;;  %v3556_v19 = vpop.f32.mrb[12].mxu0  ;;  %v1831_v11 = vrot.slane %v4984_v32, 1  ;;  %v1750_v17 = vrot.slane %v4936_v62, 7 }
 0x207   : > { %v1848_v29 = vrot.slane %v4989_v3, 1  ;;  %4017 = vrot.lane.b32.xlu0 %v4016_v42, %s4188_s8  ;;  %v1642_v58 = vmul.f32 %v3556_v19, %v4883_v33  ;;  %v1510_v38 = vpop.f32.mrb[13].mxu0  ;;  %v4021_v8 = vpack.i.bf16 %v4989_v3, %v4977_v20 }
 0x208   : > { %v1847_v41 = vrot.slane %v4992_v7, 1  ;;  %v1640_v15 = vmul.f32 %v4883_v33, %v1510_v38  ;;  %v3557_v30 = vpop.f32.mrb[14].mxu0  ;;  %v4026_v28 = vpack.i.bf16 %v4992_v7, %v4984_v32 }
 0x209   : > { %v1681_v48 = vadd.f32 %v4888_v40, %v1642_v58  ;;  %v1643_v49 = vmul.f32 %v3557_v30, %v4883_v33  ;;  %4022 = vrot.lane.b32.xlu1 %v4021_v8, %s4187_s30  ;;  %v1513_v57 = vpop.f32.mrb[15].mxu0  ;;  %v1864_v5 = vsel %vm456_vm0, %v1832_v34, %v1848_v29  ;;  %v1880_v14 = vsel %vm456_vm0, %v1848_v29, %v1832_v34 }
 0x20a   : > { %v1679_v37 = vadd.f32 %v4888_v40, %v1640_v15  ;;  %v1641_v55 = vmul.f32 %v4883_v33, %v1513_v57  ;;  %v1902_v0 = vsel %vm286_vm1, 0.0, %v1880_v14  ;;  %v1863_v26 = vsel %vm456_vm0, %v1831_v11, %v1847_v41 }
 0x20b   : > { %v5024_v6 = vmax.f32 %v1681_v48, 0.0  ;;  %v1682_v9 = vadd.f32 %v4888_v40, %v1643_v49  ;;  %4027 = vrot.lane.b32.xlu0 %v4026_v28, %s4187_s30  ;;  %v4031_v56 = vpack.i.bf16 %v1902_v0, %v1864_v5  ;;  %v1879_v60 = vsel %vm456_vm0, %v1847_v41, %v1831_v11 }
 0x20c   : > { %v5030_v12 = vmax.f32 %v1679_v37, 0.0  ;;  %v1680_v43 = vadd.f32 %v4888_v40, %v1641_v55  ;;  %v1900_v10 = vsel %vm286_vm1, 0.0, %v1879_v60  ;;  %v5085_v28 = vsel %vm355_vm4, %v1734_v51, %v1750_v17 }
 0x20d   : > { %v5041_v16 = vmax.f32 %v1682_v9, 0.0  ;;  %4032 = vrot.lane.b32.xlu1 %v4031_v56, %s4188_s8  ;;  %v4036_v59 = vpack.i.bf16 %v1900_v10, %v1863_v26  ;;  %v1834_v45 = vrot.slane %v5024_v6, 1  ;;  %v1733_v48 = vrot.slane %v4927_v54, 7 }
 0x20e   : > { %v5046_v25 = vmax.f32 %v1680_v43, 0.0  ;;  %v3560_v39 = vpop.f32.mrb[16].mxu0  ;;  %v1833_v18 = vrot.slane %v5030_v12, 1  ;;  %v1749_v49 = vrot.slane %v4940_v44, 7  ;;  %v1736_v14 = vrot.slane %v4977_v20, 7 }
 0x20f   : > { %v1850_v53 = vrot.slane %v5041_v16, 1  ;;  %4037 = vrot.lane.b32.xlu0 %v4036_v59, %s4188_s8  ;;  %v1646_v63 = vmul.f32 %v3560_v39, %v4883_v33  ;;  %v1526_v24 = vpop.f32.mrb[17].mxu0  ;;  %v4041_v13 = vpack.i.bf16 %v5041_v16, %v5024_v6  ;;  %v1735_v37 = vrot.slane %v4984_v32, 7 }
 0x210   : > { %v1849_v50 = vrot.slane %v5046_v25, 1  ;;  %v1644_v62 = vmul.f32 %v4883_v33, %v1526_v24  ;;  %v3561_v23 = vpop.f32.mrb[18].mxu0  ;;  %v4046_v47 = vpack.i.bf16 %v5046_v25, %v5030_v12  ;;  %v5098_v26 = vsel %vm355_vm4, %v1750_v17, %v1734_v51 }
 0x211   : > { %v1685_v27 = vadd.f32 %v4888_v40, %v1646_v63  ;;  %v1647_v31 = vmul.f32 %v3561_v23, %v4883_v33  ;;  %4042 = vrot.lane.b32.xlu1 %v4041_v13, %s4187_s30  ;;  %v1529_v52 = vpop.f32.mrb[19].mxu0  ;;  %v1866_v36 = vsel %vm456_vm0, %v1834_v45, %v1850_v53  ;;  %v1882_v4 = vsel %vm456_vm0, %v1850_v53, %v1834_v45 }
 0x212   : > { %v1683_v42 = vadd.f32 %v4888_v40, %v1644_v62  ;;  %v1645_v19 = vmul.f32 %v4883_v33, %v1529_v52  ;;  %v1906_v34 = vsel %vm286_vm1, 0.0, %v1882_v4  ;;  %v1865_v29 = vsel %vm456_vm0, %v1833_v18, %v1849_v50 }
 0x213   : > { %v5072_v58 = vmax.f32 %v1685_v27, 0.0  ;;  %v1686_v38 = vadd.f32 %v4888_v40, %v1647_v31  ;;  %4047 = vrot.lane.b32.xlu0 %v4046_v47, %s4187_s30  ;;  %v4051_v8 = vpack.i.bf16 %v1906_v34, %v1866_v36  ;;  %v1881_v11 = vsel %vm456_vm0, %v1849_v50, %v1833_v18 }
 0x214   : > { %v5078_v41 = vmax.f32 %v1683_v42, 0.0  ;;  %v1684_v15 = vadd.f32 %v4888_v40, %v1645_v19  ;;  %v1904_v30 = vsel %vm286_vm1, 0.0, %v1881_v11  ;;  %v1752_v4 = vrot.slane %v4989_v3, 7 }
 0x215   : > { %v5089_v57 = vmax.f32 %v1686_v38, 0.0  ;;  %4052 = vrot.lane.b32.xlu1 %v4051_v8, %s4188_s8  ;;  %v4056_v5 = vpack.i.bf16 %v1904_v30, %v1865_v29  ;;  %v1836_v9 = vrot.slane %v5072_v58, 1  ;;  %v1751_v29 = vrot.slane %v4992_v7, 7 }
 0x216   : > { %v5094_v55 = vmax.f32 %v1684_v15, 0.0  ;;  %v3564_v0 = vpop.f32.mrb[20].mxu0  ;;  %v1835_v59 = vrot.slane %v5078_v41, 1  ;;  %v1738_v38 = vrot.slane %v5024_v6, 7  ;;  %v1737_v15 = vrot.slane %v5030_v12, 7 }
 0x217   : > { %v1852_v56 = vrot.slane %v5089_v57, 1  ;;  %4057 = vrot.lane.b32.xlu0 %v4056_v5, %s4188_s8  ;;  %v1650_v60 = vmul.f32 %v3564_v0, %v4883_v33  ;;  %v1542_v43 = vpop.f32.mrb[21].mxu0  ;;  %v4061_v10 = vpack.i.bf16 %v5089_v57, %v5072_v58  ;;  %v1754_v30 = vrot.slane %v5041_v16, 7 }
 0x218   : > { %v1851_v39 = vrot.slane %v5094_v55, 1  ;;  %v1648_v45 = vmul.f32 %v4883_v33, %v1542_v43  ;;  %v3565_v51 = vpop.f32.mrb[22].mxu0  ;;  %v4066_v17 = vpack.i.bf16 %v5094_v55, %v5078_v41  ;;  %v1755_v54 = vrot.slane %v5094_v55, 7 }
 0x219   : > { %v1689_v53 = vadd.f32 %v4888_v40, %v1650_v60  ;;  %v1651_v63 = vmul.f32 %v3565_v51, %v4883_v33  ;;  %4062 = vrot.lane.b32.xlu1 %v4061_v10, %s4187_s30  ;;  %v1545_v24 = vpop.f32.mrb[23].mxu0  ;;  %v1868_v13 = vsel %vm456_vm0, %v1836_v9, %v1852_v56  ;;  %v1884_v18 = vsel %vm456_vm0, %v1852_v56, %v1836_v9 }
 0x21a   : > { %v1687_v50 = vadd.f32 %v4888_v40, %v1648_v45  ;;  %v1649_v62 = vmul.f32 %v4883_v33, %v1545_v24  ;;  %v1910_v23 = vsel %vm286_vm1, 0.0, %v1884_v18  ;;  %v1867_v47 = vsel %vm456_vm0, %v1835_v59, %v1851_v39 }
 0x21b   : > { %v5124_v27 = vmax.f32 %v1689_v53, 0.0  ;;  %v1690_v31 = vadd.f32 %v4888_v40, %v1651_v63  ;;  %4067 = vrot.lane.b32.xlu0 %v4066_v17, %s4187_s30  ;;  %v4071_v52 = vpack.i.bf16 %v1910_v23, %v1868_v13  ;;  %v1883_v36 = vsel %vm456_vm0, %v1851_v39, %v1835_v59 }
 0x21c   : > { %v5131_v42 = vmax.f32 %v1687_v50, 0.0  ;;  %v1688_v19 = vadd.f32 %v4888_v40, %v1649_v62  ;;  %v1908_v34 = vsel %vm286_vm1, 0.0, %v1883_v36  ;;  %v5151_v9 = vsel %vm355_vm4, %v1733_v48, %v1749_v49 }
 0x21d   : > { %v5138_v8 = vmax.f32 %v1690_v31, 0.0  ;;  %4072 = vrot.lane.b32.xlu1 %v4071_v52, %s4188_s8  ;;  %v4076_v11 = vpack.i.bf16 %v1908_v34, %v1867_v47  ;;  %v1838_v56 = vrot.slane %v5124_v27, 1  ;;  %v5288_v3 = vsel %vm355_vm4, %v1735_v37, %v1751_v29 }
 0x21e   : > { %v5143_v5 = vmax.f32 %v1688_v19, 0.0  ;;  %v3568_v0 = vpop.f32.mrb[24].mxu0  ;;  %v1837_v39 = vrot.slane %v5131_v42, 1 }
 0x21f   : > { %v1854_v60 = vrot.slane %v5138_v8, 1  ;;  %4077 = vrot.lane.b32.xlu0 %v4076_v11, %s4188_s8  ;;  %v1654_v43 = vmul.f32 %v3568_v0, %v4883_v33  ;;  %v1558_v10 = vpop.f32.mrb[25].mxu0  ;;  %v4081_v59 = vpack.i.bf16 %v5138_v8, %v5124_v27 }
 0x220   : > { %v1853_v45 = vrot.slane %v5143_v5, 1  ;;  %v1652_v51 = vmul.f32 %v4883_v33, %v1558_v10  ;;  %v3569_v17 = vpop.f32.mrb[26].mxu0  ;;  %v4086_v53 = vpack.i.bf16 %v5143_v5, %v5131_v42  ;;  %v1740_v10 = vrot.slane %v5072_v58, 7 }
 0x221   : > { %v1693_v63 = vadd.f32 %v4888_v40, %v1654_v43  ;;  %v1655_v24 = vmul.f32 %v3569_v17, %v4883_v33  ;;  %4082 = vrot.lane.b32.xlu1 %v4081_v59, %s4187_s30  ;;  %v1561_v13 = vpop.f32.mrb[27].mxu0  ;;  %v1870_v18 = vsel %vm456_vm0, %v1838_v56, %v1854_v60  ;;  %v1886_v50 = vsel %vm456_vm0, %v1854_v60, %v1838_v56 }
 0x222   : > { %v1691_v62 = vadd.f32 %v4888_v40, %v1652_v51  ;;  %v1653_v23 = vmul.f32 %v4883_v33, %v1561_v13  ;;  %v1914_v47 = vsel %vm286_vm1, 0.0, %v1886_v50  ;;  %v1869_v31 = vsel %vm456_vm0, %v1837_v39, %v1853_v45 }
 0x223   : > { %v5177_v52 = vmax.f32 %v1693_v63, 0.0  ;;  %v1694_v36 = vadd.f32 %v4888_v40, %v1655_v24  ;;  %4087 = vrot.lane.b32.xlu0 %v4086_v53, %s4187_s30  ;;  %v4091_v19 = vpack.i.bf16 %v1914_v47, %v1870_v18  ;;  %v1885_v34 = vsel %vm456_vm0, %v1853_v45, %v1837_v39 }
 0x224   : > { %v5183_v11 = vmax.f32 %v1691_v62, 0.0  ;;  %v1692_v0 = vadd.f32 %v4888_v40, %v1653_v23  ;;  %v1912_v56 = vsel %vm286_vm1, 0.0, %v1885_v34  ;;  %v5194_v60 = vsel %vm355_vm4, %v1749_v49, %v1733_v48 }
 0x225   : > { %v1753_v43 = vrot.slane %v5046_v25, 7  ;;  %v5198_v59 = vmax.f32 %v1694_v36, 0.0  ;;  %4092 = vrot.lane.b32.xlu1 %v4091_v19, %s4188_s8  ;;  %v4096_v39 = vpack.i.bf16 %v1912_v56, %v1869_v31  ;;  %v1739_v45 = vrot.slane %v5078_v41, 7 }
 0x226   : > { %v1756_v51 = vrot.slane %v5089_v57, 7  ;;  %v5204_v44 = vmax.f32 %v1692_v0, 0.0  ;;  %v3572_v17 = vpop.f32.mrb[28].mxu0  ;;  %v1840_v48 = vrot.slane %v5177_v52, 1  ;;  %v1839_v13 = vrot.slane %v5183_v11, 1 }
 0x227   : > { %v1856_v49 = vrot.slane %v5198_v59, 1  ;;  %4097 = vrot.lane.b32.xlu0 %v4096_v39, %s4188_s8  ;;  %v1658_v53 = vmul.f32 %v3572_v17, %v4883_v33  ;;  %v1574_v63 = vpop.f32.mrb[29].mxu0  ;;  %v4101_v24 = vpack.i.bf16 %v5198_v59, %v5177_v52  ;;  %v5331_v2 = vsel %vm355_vm4, %v1737_v15, %v1753_v43 }
 0x228   : > { %v1855_v18 = vrot.slane %v5204_v44, 1  ;;  %v1656_v50 = vmul.f32 %v4883_v33, %v1574_v63  ;;  %v3573_v62 = vpop.f32.mrb[30].mxu0  ;;  %v4106_v23 = vpack.i.bf16 %v5204_v44, %v5183_v11  ;;  %v5339_v6 = vsel %vm355_vm4, %v1753_v43, %v1737_v15 }
 0x229   : > { %v1697_v47 = vadd.f32 %v4888_v40, %v1658_v53  ;;  %v1659_v31 = vmul.f32 %v3573_v62, %v4883_v33  ;;  %4102 = vrot.lane.b32.xlu1 %v4101_v24, %s4187_s30  ;;  %v1577_v36 = vpop.f32.mrb[31].mxu0  ;;  %v1872_v19 = vsel %vm456_vm0, %v1840_v48, %v1856_v49  ;;  %v1888_v34 = vsel %vm456_vm0, %v1856_v49, %v1840_v48  ;;  %v5233_v53 = vld [vmem:[%s5867_s4] sm:$0x3f]  }
 0x22a   : > { %v1695_v0 = vadd.f32 %v4888_v40, %v1656_v50  ;;  %v1657_v56 = vmul.f32 %v4883_v33, %v1577_v36  ;;  %v1918_v39 = vsel %vm286_vm1, 0.0, %v1888_v34  ;;  %v1871_v17 = vsel %vm456_vm0, %v1839_v13, %v1855_v18 }
 0x22b   : > { %v5235_v63 = vmax.f32 %v1697_v47, 0.0  ;;  %v1698_v24 = vadd.f32 %v4888_v40, %v1659_v31  ;;  %4107 = vrot.lane.b32.xlu0 %v4106_v23, %s4187_s30  ;;  %v4111_v48 = vpack.i.bf16 %v1918_v39, %v1872_v19  ;;  %v1887_v33 = vsel %vm456_vm0, %v1855_v18, %v1839_v13 }
 0x22c   : > { %v5241_v49 = vmax.f32 %v1695_v0, 0.0  ;;  %v1696_v50 = vadd.f32 %v4888_v40, %v1657_v56  ;;  %v1916_v62 = vsel %vm286_vm1, 0.0, %v1887_v33  ;;  %v2366_v36 = vsel %vm970_vm2, %v4955_v46, 0 }
 0x22d   : > { %v1742_v47 = vrot.slane %v5124_v27, 7  ;;  %v1741_v31 = vrot.slane %v5131_v42, 7  ;;  %v1730_v34 = vmax.f32 %v1698_v24, 0.0  ;;  %4112 = vrot.lane.b32.xlu1 %v4111_v48, %s4188_s8  ;;  %v4116_v23 = vpack.i.bf16 %v1916_v62, %v1871_v17  ;;  %3575 = vmatpush3.bf16.msra.mxu1 %v2366_v36 }
 0x22e   : > { %v1758_v13 = vrot.slane %v5138_v8, 7  ;;  %v1757_v18 = vrot.slane %v5143_v5, 7  ;;  %v1728_v40 = vmax.f32 %v1696_v50, 0.0  ;;  %v5259_v46 = vsel %vm355_vm4, %v1736_v14, %v1752_v4  ;;  %3808 = vmatprep.subr.msk.bf16.mxu1 %vm970_vm2, %v5233_v53 }
 0x22f   : > { %v1842_v27 = vrot.slane %v5235_v63, 1  ;;  %v1858_v42 = vrot.slane %v1730_v34, 1  ;;  %4117 = vrot.lane.b32.xlu0 %v4116_v23, %s4188_s8  ;;  %v4121_v8 = vpack.i.bf16 %v1730_v34, %v5235_v63  ;;  %v5272_v5 = vsel %vm355_vm4, %v1752_v4, %v1736_v14 }
 0x230   : > { %v1744_v19 = vrot.slane %v5177_v52, 7  ;;  %v1841_v0 = vrot.slane %v5241_v49, 1  ;;  %v1857_v56 = vrot.slane %v1728_v40, 1  ;;  %v4126_v39 = vpack.i.bf16 %v1728_v40, %v5241_v49 }
 0x231   : > { %4122 = vrot.lane.b32.xlu1 %v4121_v8, %s4187_s30  ;;  %v1874_v17 = vsel %vm456_vm0, %v1842_v27, %v1858_v42  ;;  %v1890_v20 = vsel %vm456_vm0, %v1858_v42, %v1842_v27  ;;  %v5296_v14 = vsel %vm355_vm4, %v1751_v29, %v1735_v37  ;;  %v1743_v4 = vrot.slane %v5183_v11, 7 }
 0x232   : > { %v1922_v52 = vsel %vm286_vm1, 0.0, %v1890_v20  ;;  %v1873_v24 = vsel %vm456_vm0, %v1841_v0, %v1857_v56  ;;  %v1889_v48 = vsel %vm456_vm0, %v1857_v56, %v1841_v0  ;;  %v1760_v33 = vrot.slane %v5198_v59, 7 }
 0x233   : > { %4127 = vrot.lane.b32.xlu0 %v4126_v39, %s4187_s30  ;;  %v4136_v32 = vpack.i.bf16 %v1922_v52, %v1874_v17  ;;  %v1920_v7 = vsel %vm286_vm1, 0.0, %v1889_v48  ;;  %v5315_v37 = vsel %vm355_vm4, %v1738_v38, %v1754_v30  ;;  %v5323_v11 = vsel %vm355_vm4, %v1754_v30, %v1738_v38 }
 0x234   : > { %v4131_v29 = vpack.i.bf16 %v1920_v7, %v1873_v24  ;;  %v1759_v16 = vrot.slane %v5204_v44, 7  ;;  %v1762_v38 = vrot.slane %v1730_v34, 7  ;;  %v5349_v30 = vsel %vm355_vm4, %v1740_v10, %v1756_v51 }
 0x235   : > { %4137 = vrot.lane.b32.xlu1 %v4136_v32, %s4188_s8  ;;  %v5357_v12 = vsel %vm355_vm4, %v1756_v51, %v1740_v10  ;;  %v1761_v25 = vrot.slane %v1728_v40, 7  ;;  %v5365_v15 = vsel %vm355_vm4, %v1739_v45, %v1755_v54  ;;  %v5373_v58 = vsel %vm355_vm4, %v1755_v54, %v1739_v45 }
 0x236   : > { %v5377_v57 = vsel %vm355_vm4, %v1742_v47, %v1758_v13  ;;  %v1746_v43 = vrot.slane %v5235_v63, 7  ;;  %v5383_v10 = vsel %vm355_vm4, %v1758_v13, %v1742_v47  ;;  %v5387_v41 = vsel %vm355_vm4, %v1741_v31, %v1757_v18 }
 0x237   : > { %4132 = vrot.lane.b32.xlu0 %v4131_v29, %s4188_s8  ;;  %v5391_v55 = vsel %vm355_vm4, %v1757_v18, %v1741_v31  ;;  %v1745_v59 = vrot.slane %v5241_v49, 7  ;;  %v5396_v45 = vsel %vm355_vm4, %v1744_v19, %v1760_v33  ;;  %v5400_v51 = vsel %vm355_vm4, %v1760_v33, %v1744_v19 }
 0x238   : > { %v5404_v54 = vsel %vm355_vm4, %v1743_v4, %v1759_v16  ;;  %v5408_v44 = vsel %vm355_vm4, %v1759_v16, %v1743_v4  ;;  %v5412_v63 = vsel %vm355_vm4, %v1746_v43, %v1762_v38  ;;  %v5416_v49 = vsel %vm355_vm4, %v1762_v38, %v1746_v43 }
 0x239   : > { %v5420_v50 = vsel %vm355_vm4, %v1745_v59, %v1761_v25  ;;  %v5424_v62 = vsel %vm355_vm4, %v1761_v25, %v1745_v59  ;;  %v1797_v40 = vsel %vm283_vm5, 0.0, %v4944_v22  ;;  %v1795_v0 = vsel %vm283_vm5, 0.0, %v5039_v35 }
 0x26b   : > { %v3983_v36 = vpop.permute.xlu1 %3982 }
 0x26c   : > { %v3988_v47 = vpop.permute.xlu0 %3987  ;;  %v3985_v31 = vunpack.i.h.bf16 %v3983_v36  ;;  %v3984_v34 = vunpack.i.l.bf16 %v3983_v36 }
 0x26d   : > { %v3990_v23 = vunpack.i.h.bf16 %v3988_v47  ;;  %v3989_v13 = vunpack.i.l.bf16 %v3988_v47 }
 0x26e   : > { %v2181_v8 = vsel %vm781_vm6, %v1797_v40, %v3984_v34  ;;  %v2182_v19 = vsel %vm781_vm6, %v4934_v61, %v3985_v31  ;;  %v1799_v31 = vsel %vm283_vm5, 0.0, %v5194_v60 }
 0x26f   : > { %v3993_v18 = vpop.permute.xlu1 %3992  ;;  %v2179_v22 = vsel %vm781_vm6, %v1795_v0, %v3989_v13  ;;  %v2180_v52 = vsel %vm781_vm6, %v4998_v21, %v3990_v23  ;;  %v1801_v21 = vsel %vm283_vm5, 0.0, %v5098_v26 }
 0x270   : > { %v3995_v27 = vunpack.i.h.bf16 %v3993_v18  ;;  %v3994_v42 = vunpack.i.l.bf16 %v3993_v18 }
 0x271   : > { %v3998_v56 = vpop.permute.xlu0 %3997 }
 0x272   : > { %v2213_v39 = vsel %vm814_vm7, %v2181_v8, %v3994_v42  ;;  %v2214_v17 = vsel %vm814_vm7, %v2182_v19, %v3995_v27  ;;  %v4000_v20 = vunpack.i.h.bf16 %v3998_v56  ;;  %v3999_v4 = vunpack.i.l.bf16 %v3998_v56 }
 0x273   : > { %v2244_v24 = vpack.c.bf16 %v2214_v17, %v2213_v39  ;;  %v4003_v48 = vpop.permute.xlu1 %4002 }
 0x274   : > { %v2211_v61 = vsel %vm814_vm7, %v2179_v22, %v3999_v4  ;;  %v2212_v33 = vsel %vm814_vm7, %v2180_v52, %v4000_v20  ;;  %v4005_v32 = vunpack.i.h.bf16 %v4003_v48  ;;  %v4004_v7 = vunpack.i.l.bf16 %v4003_v48 }
 0x275   : > { %2260 = vst.msk [vmem:[#allocation2 + $0x10] sm:$0xff] %vm319_vm3, %v2244_v24  ;;  %v2243_v35 = vpack.c.bf16 %v2212_v33, %v2211_v61  ;;  %v4008_v29 = vpop.permute.xlu0 %4007  ;;  %v2583_v20 = vsel %vm970_vm2, %v5233_v53, 0  ;;  %v1805_v48 = vsel %vm283_vm5, 0.0, %v5272_v5 }
 0x276   : > { %v4010_v16 = vunpack.i.h.bf16 %v4008_v29  ;;  %v4009_v38 = vunpack.i.l.bf16 %v4008_v29  ;;  %v2185_v36 = vsel %vm781_vm6, %v1801_v21, %v4004_v7  ;;  %v2186_v47 = vsel %vm781_vm6, %v5085_v28, %v4005_v32 }
 0x277   : > { %2259 = vst.msk [vmem:[#allocation2 + $0x8] sm:$0xff] %vm319_vm3, %v2243_v35  ;;  %v4013_v25 = vpop.permute.xlu1 %4012  ;;  %v1803_v32 = vsel %vm283_vm5, 0.0, %v5296_v14 }
 0x278   : > { %v4015_v43 = vunpack.i.h.bf16 %v4013_v25  ;;  %v4014_v59 = vunpack.i.l.bf16 %v4013_v25  ;;  %v2183_v26 = vsel %vm781_vm6, %v1799_v31, %v4009_v38  ;;  %v2184_v27 = vsel %vm781_vm6, %v5151_v9, %v4010_v16  ;;  %v5468_v9 = vld [vmem:[%s5867_s4 + $0x10] sm:$0x3f]  }
 0x279   : > { %v4018_v34 = vpop.permute.xlu0 %4017 }
 0x27a   : > { %v2217_v23 = vsel %vm814_vm7, %v2185_v36, %v4014_v59  ;;  %v2218_v13 = vsel %vm814_vm7, %v2186_v47, %v4015_v43  ;;  %v4020_v18 = vunpack.i.h.bf16 %v4018_v34  ;;  %v4019_v40 = vunpack.i.l.bf16 %v4018_v34 }
 0x27b   : > { %v2246_v42 = vpack.c.bf16 %v2218_v13, %v2217_v23  ;;  %v4023_v8 = vpop.permute.xlu1 %4022 }
 0x27c   : > { %v2215_v28 = vsel %vm814_vm7, %v2183_v26, %v4019_v40  ;;  %v2216_v19 = vsel %vm814_vm7, %v2184_v27, %v4020_v18  ;;  %v4025_v0 = vunpack.i.h.bf16 %v4023_v8  ;;  %v4024_v56 = vunpack.i.l.bf16 %v4023_v8  ;;  %v5473_v52 = vld [vmem:[#allocation2 + $0x10] sm:$0xff] }
 0x27d   : > { %2262 = vst.msk [vmem:[#allocation2 + $0x20] sm:$0xff] %vm319_vm3, %v2246_v42  ;;  %v2245_v60 = vpack.c.bf16 %v2216_v19, %v2215_v28  ;;  %v4028_v39 = vpop.permute.xlu0 %4027  ;;  %v1809_v26 = vsel %vm283_vm5, 0.0, %v5323_v11  ;;  %v1807_v19 = vsel %vm283_vm5, 0.0, %v5339_v6 }
 0x27e   : > { %v5461_v17 = vld [vmem:[#allocation2 + $0x8] sm:$0xff]  ;;  %v4030_v4 = vunpack.i.h.bf16 %v4028_v39  ;;  %v4029_v22 = vunpack.i.l.bf16 %v4028_v39  ;;  %v2189_v33 = vsel %vm781_vm6, %v1805_v48, %v4024_v56  ;;  %v2190_v35 = vsel %vm781_vm6, %v5259_v46, %v4025_v0 }
 0x27f   : > { %2261 = vst.msk [vmem:[#allocation2 + $0x18] sm:$0xff] %vm319_vm3, %v2245_v60  ;;  %3576 = vmatprep.mubr.msk.bf16.mxu1 %vm319_vm3, %v5461_v17  ;;  %v4033_v24 = vpop.permute.xlu1 %4032 }
 0x280   : > { %3577 = vmatmul.mubr.msk.bf16.vlgmr.msra.gmra.mrb[0].mxu1 %vm319_vm3, %v5473_v52  ;;  %v4035_v53 = vunpack.i.h.bf16 %v4033_v24  ;;  %v4034_v61 = vunpack.i.l.bf16 %v4033_v24  ;;  %v2187_v25 = vsel %vm781_vm6, %v1803_v32, %v4029_v22  ;;  %v2188_v46 = vsel %vm781_vm6, %v5288_v3, %v4030_v4 }
 0x281   : > { %3609 = vmatpush3.bf16.msra.mxu1 %v2583_v20  ;;  %v4038_v7 = vpop.permute.xlu0 %4037 }
 0x282   : > { %v2221_v29 = vsel %vm814_vm7, %v2189_v33, %v4034_v61  ;;  %v2222_v5 = vsel %vm814_vm7, %v2190_v35, %v4035_v53  ;;  %v4040_v16 = vunpack.i.h.bf16 %v4038_v7  ;;  %v4039_v38 = vunpack.i.l.bf16 %v4038_v7  ;;  %3809 = vmatprep.subr.msk.bf16.mxu1 %vm970_vm2, %v5468_v9 }
 0x283   : > { %v2248_v21 = vpack.c.bf16 %v2222_v5, %v2221_v29  ;;  %v4043_v43 = vpop.permute.xlu1 %4042  ;;  %v1813_v5 = vsel %vm283_vm5, 0.0, %v5357_v12 }
 0x284   : > { %v2219_v14 = vsel %vm814_vm7, %v2187_v25, %v4039_v38  ;;  %v2220_v59 = vsel %vm814_vm7, %v2188_v46, %v4040_v16  ;;  %v4045_v47 = vunpack.i.h.bf16 %v4043_v43  ;;  %v4044_v31 = vunpack.i.l.bf16 %v4043_v43  ;;  %v5501_v3 = vld [vmem:[#allocation2 + $0x20] sm:$0xff] }
 0x285   : > { %2264 = vst.msk [vmem:[#allocation2 + $0x30] sm:$0xff] %vm319_vm3, %v2248_v21  ;;  %v2247_v36 = vpack.c.bf16 %v2220_v59, %v2219_v14  ;;  %v4048_v34 = vpop.permute.xlu0 %4047  ;;  %v1811_v21 = vsel %vm283_vm5, 0.0, %v5373_v58 }
 0x286   : > { %v5496_v23 = vld [vmem:[#allocation2 + $0x18] sm:$0xff]  ;;  %v4050_v13 = vunpack.i.h.bf16 %v4048_v34  ;;  %v4049_v18 = vunpack.i.l.bf16 %v4048_v34  ;;  %v2193_v8 = vsel %vm781_vm6, %v1809_v26, %v4044_v31  ;;  %v2194_v28 = vsel %vm781_vm6, %v5315_v37, %v4045_v47 }
 0x287   : > { %2263 = vst.msk [vmem:[#allocation2 + $0x28] sm:$0xff] %vm319_vm3, %v2247_v36  ;;  %3580 = vmatprep.mubr.msk.bf16.mxu1 %vm319_vm3, %v5496_v23  ;;  %v4053_v40 = vpop.permute.xlu1 %4052 }
 0x288   : > { %3581 = vmatmul.mubr.msk.bf16.gmra.mrb[4].mxu1 %vm319_vm3, %v5501_v3  ;;  %v4055_v27 = vunpack.i.h.bf16 %v4053_v40  ;;  %v4054_v42 = vunpack.i.l.bf16 %v4053_v40  ;;  %v2191_v20 = vsel %vm781_vm6, %v1807_v19, %v4049_v18  ;;  %v2192_v4 = vsel %vm781_vm6, %v5331_v2, %v4050_v13 }
 0x289   : > { %v4058_v60 = vpop.permute.xlu0 %4057 }
 0x28a   : > { %v2225_v0 = vsel %vm814_vm7, %v2193_v8, %v4054_v42  ;;  %v2226_v56 = vsel %vm814_vm7, %v2194_v28, %v4055_v27  ;;  %v4060_v11 = vunpack.i.h.bf16 %v4058_v60  ;;  %v4059_v39 = vunpack.i.l.bf16 %v4058_v60 }
 0x28b   : > { %v2250_v22 = vpack.c.bf16 %v2226_v56, %v2225_v0  ;;  %v4063_v24 = vpop.permute.xlu1 %4062  ;;  %v1817_v60 = vsel %vm283_vm5, 0.0, %v5383_v10 }
 0x28c   : > { %v2223_v37 = vsel %vm814_vm7, %v2191_v20, %v4059_v39  ;;  %v2224_v48 = vsel %vm814_vm7, %v2192_v4, %v4060_v11  ;;  %v4065_v53 = vunpack.i.h.bf16 %v4063_v24  ;;  %v4064_v61 = vunpack.i.l.bf16 %v4063_v24  ;;  %v5527_v2 = vld [vmem:[#allocation2 + $0x30] sm:$0xff] }
 0x28d   : > { %2266 = vst.msk [vmem:[#allocation2 + $0x40] sm:$0xff] %vm319_vm3, %v2250_v22  ;;  %v2249_v6 = vpack.c.bf16 %v2224_v48, %v2223_v37  ;;  %v4068_v33 = vpop.permute.xlu0 %4067  ;;  %v1815_v20 = vsel %vm283_vm5, 0.0, %v5391_v55 }
 0x28e   : > { %v5522_v35 = vld [vmem:[#allocation2 + $0x28] sm:$0xff]  ;;  %v4070_v32 = vunpack.i.h.bf16 %v4068_v33  ;;  %v4069_v7 = vunpack.i.l.bf16 %v4068_v33  ;;  %v2197_v25 = vsel %vm781_vm6, %v1813_v5, %v4064_v61  ;;  %v2198_v46 = vsel %vm781_vm6, %v5349_v30, %v4065_v53 }
 0x28f   : > { %2265 = vst.msk [vmem:[#allocation2 + $0x38] sm:$0xff] %vm319_vm3, %v2249_v6  ;;  %3584 = vmatprep.mubr.msk.bf16.mxu1 %vm319_vm3, %v5522_v35  ;;  %v4073_v29 = vpop.permute.xlu1 %4072 }
 0x290   : > { %3585 = vmatmul.mubr.msk.bf16.gmra.mrb[8].mxu1 %vm319_vm3, %v5527_v2  ;;  %v4075_v16 = vunpack.i.h.bf16 %v4073_v29  ;;  %v4074_v38 = vunpack.i.l.bf16 %v4073_v29  ;;  %v2195_v47 = vsel %vm781_vm6, %v1811_v21, %v4069_v7  ;;  %v2196_v31 = vsel %vm781_vm6, %v5365_v15, %v4070_v32 }
 0x291   : > { %v4078_v43 = vpop.permute.xlu0 %4077 }
 0x292   : > { %v2229_v14 = vsel %vm814_vm7, %v2197_v25, %v4074_v38  ;;  %v2230_v59 = vsel %vm814_vm7, %v2198_v46, %v4075_v16  ;;  %v4080_v12 = vunpack.i.h.bf16 %v4078_v43  ;;  %v4079_v36 = vunpack.i.l.bf16 %v4078_v43 }
 0x293   : > { %v2252_v34 = vpack.c.bf16 %v2230_v59, %v2229_v14  ;;  %v4083_v13 = vpop.permute.xlu1 %4082  ;;  %v1821_v46 = vsel %vm283_vm5, 0.0, %v5400_v51 }
 0x294   : > { %v2227_v30 = vsel %vm814_vm7, %v2195_v47, %v4079_v36  ;;  %v2228_v18 = vsel %vm814_vm7, %v2196_v31, %v4080_v12  ;;  %v4085_v40 = vunpack.i.h.bf16 %v4083_v13  ;;  %v4084_v26 = vunpack.i.l.bf16 %v4083_v13  ;;  %v5553_v15 = vld [vmem:[#allocation2 + $0x40] sm:$0xff] }
 0x295   : > { %2268 = vst.msk [vmem:[#allocation2 + $0x50] sm:$0xff] %vm319_vm3, %v2252_v34  ;;  %v2251_v58 = vpack.c.bf16 %v2228_v18, %v2227_v30  ;;  %v4088_v27 = vpop.permute.xlu0 %4087  ;;  %v1819_v12 = vsel %vm283_vm5, 0.0, %v5408_v44 }
 0x296   : > { %v5548_v42 = vld [vmem:[#allocation2 + $0x38] sm:$0xff]  ;;  %v4090_v8 = vunpack.i.h.bf16 %v4088_v27  ;;  %v4089_v28 = vunpack.i.l.bf16 %v4088_v27  ;;  %v2201_v11 = vsel %vm781_vm6, %v1817_v60, %v4084_v26  ;;  %v2202_v39 = vsel %vm781_vm6, %v5377_v57, %v4085_v40 }
 0x297   : > { %2267 = vst.msk [vmem:[#allocation2 + $0x48] sm:$0xff] %vm319_vm3, %v2251_v58  ;;  %3588 = vmatprep.mubr.msk.bf16.mxu1 %vm319_vm3, %v5548_v42  ;;  %v4093_v19 = vpop.permute.xlu1 %4092 }
 0x298   : > { %3589 = vmatmul.mubr.msk.bf16.gmra.mrb[12].mxu1 %vm319_vm3, %v5553_v15  ;;  %v4095_v0 = vunpack.i.h.bf16 %v4093_v19  ;;  %v4094_v56 = vunpack.i.l.bf16 %v4093_v19  ;;  %v2199_v48 = vsel %vm781_vm6, %v1815_v20, %v4089_v28  ;;  %v2200_v6 = vsel %vm781_vm6, %v5387_v41, %v4090_v8 }
 0x299   : > { %v4098_v4 = vpop.permute.xlu0 %4097 }
 0x29a   : > { %v2233_v22 = vsel %vm814_vm7, %v2201_v11, %v4094_v56  ;;  %v2234_v24 = vsel %vm814_vm7, %v2202_v39, %v4095_v0  ;;  %v4100_v10 = vunpack.i.h.bf16 %v4098_v4  ;;  %v4099_v37 = vunpack.i.l.bf16 %v4098_v4 }
 0x29b   : > { %v2254_v53 = vpack.c.bf16 %v2234_v24, %v2233_v22  ;;  %v4103_v61 = vpop.permute.xlu1 %4102  ;;  %v1825_v56 = vsel %vm283_vm5, 0.0, %v5416_v49  ;;  %v1823_v22 = vsel %vm283_vm5, 0.0, %v5424_v62 }
 0x29c   : > { %v2231_v57 = vsel %vm814_vm7, %v2199_v48, %v4099_v37  ;;  %v2232_v33 = vsel %vm814_vm7, %v2200_v6, %v4100_v10  ;;  %v4105_v32 = vunpack.i.h.bf16 %v4103_v61  ;;  %v4104_v7 = vunpack.i.l.bf16 %v4103_v61  ;;  %v5579_v41 = vld [vmem:[#allocation2 + $0x50] sm:$0xff] }
 0x29d   : > { %2270 = vst.msk [vmem:[#allocation2 + $0x60] sm:$0xff] %vm319_vm3, %v2254_v53  ;;  %v2253_v55 = vpack.c.bf16 %v2232_v33, %v2231_v57  ;;  %v4108_v29 = vpop.permute.xlu0 %4107 }
 0x29e   : > { %v5574_v5 = vld [vmem:[#allocation2 + $0x48] sm:$0xff]  ;;  %v4110_v16 = vunpack.i.h.bf16 %v4108_v29  ;;  %v4109_v38 = vunpack.i.l.bf16 %v4108_v29  ;;  %v2205_v14 = vsel %vm781_vm6, %v1821_v46, %v4104_v7  ;;  %v2206_v59 = vsel %vm781_vm6, %v5396_v45, %v4105_v32  ;;  %v2275_v32 = vld [vmem:[#allocation2] sm:$0xff] }
 0x29f   : > { %2269 = vst.msk [vmem:[#allocation2 + $0x58] sm:$0xff] %vm319_vm3, %v2253_v55  ;;  %3592 = vmatprep.mubr.msk.bf16.mxu1 %vm319_vm3, %v5574_v5  ;;  %v4113_v25 = vpop.permute.xlu1 %4112  ;;  %v2819_v7 = vsel %vm970_vm2, %v5468_v9, 0  ;;  %v5686_v9 = vld [vmem:[%s5868_s5] ss:$0 sm:$0xff] }
 0x2a0   : > { %3593 = vmatmul.mubr.msk.bf16.gmra.mrb[16].mxu1 %vm319_vm3, %v5579_v41  ;;  %v4115_v21 = vunpack.i.h.bf16 %v4113_v25  ;;  %v4114_v43 = vunpack.i.l.bf16 %v4113_v25  ;;  %v2203_v13 = vsel %vm781_vm6, %v1819_v12, %v4109_v38  ;;  %v2204_v30 = vsel %vm781_vm6, %v5404_v54, %v4110_v16  ;;  %v4149_v12 = vld [vmem:[%s4251_s29 + $0x18] sm:$0xff] }
 0x2a1   : > { %v4118_v36 = vpop.permute.xlu0 %4117 }
 0x2a2   : > { %v2237_v47 = vsel %vm814_vm7, %v2205_v14, %v4114_v43  ;;  %v2238_v31 = vsel %vm814_vm7, %v2206_v59, %v4115_v21  ;;  %v4120_v51 = vunpack.i.h.bf16 %v4118_v36  ;;  %v4119_v34 = vunpack.i.l.bf16 %v4118_v36  ;;  %v4148_v21 = vld [vmem:[%s4251_s29] sm:$0xff] }
 0x2a3   : > { %v2256_v18 = vpack.c.bf16 %v2238_v31, %v2237_v47  ;;  %v4123_v58 = vpop.permute.xlu1 %4122  ;;  %v4150_v31 = vld [vmem:[%s4251_s29 + $0x8] sm:$0xff] }
 0x2a4   : > { %v2235_v45 = vsel %vm814_vm7, %v2203_v13, %v4119_v34  ;;  %v2236_v40 = vsel %vm814_vm7, %v2204_v30, %v4120_v51  ;;  %v4125_v26 = vunpack.i.h.bf16 %v4123_v58  ;;  %v4124_v27 = vunpack.i.l.bf16 %v4123_v58  ;;  %v2304_v54 = vld [vmem:[#allocation2 + $0x60] sm:$0xff] }
 0x2a5   : > { %2272 = vst.msk [vmem:[#allocation2 + $0x70] sm:$0xff] %vm319_vm3, %v2256_v18  ;;  %v2255_v44 = vpack.c.bf16 %v2236_v40, %v2235_v45  ;;  %v4128_v8 = vpop.permute.xlu0 %4127 }
 0x2a6   : > { %v5600_v28 = vld [vmem:[#allocation2 + $0x58] sm:$0xff]  ;;  %v4130_v19 = vunpack.i.h.bf16 %v4128_v8  ;;  %v4129_v60 = vunpack.i.l.bf16 %v4128_v8  ;;  %v2209_v20 = vsel %vm781_vm6, %v1825_v56, %v4124_v27  ;;  %v2210_v4 = vsel %vm781_vm6, %v5412_v63, %v4125_v26 }
 0x2a7   : > { %2271 = vst.msk [vmem:[#allocation2 + $0x68] sm:$0xff] %vm319_vm3, %v2255_v44  ;;  %3596 = vmatprep.mubr.msk.bf16.mxu1 %vm319_vm3, %v5600_v28  ;;  %v4138_v0 = vpop.permute.xlu1 %4137 }
 0x2a8   : > { %3597 = vmatmul.mubr.msk.bf16.gmra.mrb[20].mxu1 %vm319_vm3, %v2304_v54  ;;  %v4140_v11 = vunpack.i.h.bf16 %v4138_v0  ;;  %v4139_v39 = vunpack.i.l.bf16 %v4138_v0  ;;  %v2207_v6 = vsel %vm781_vm6, %v1823_v22, %v4129_v60  ;;  %v2208_v53 = vsel %vm781_vm6, %v5420_v50, %v4130_v19  ;;  %v4151_v19 = vld [vmem:[%s4251_s29 + $0x30] sm:$0xff]  ;;  %v4152_v0 = vld [vmem:[%s4251_s29 + $0x20] sm:$0xff] }
 0x2a9   : > { %v4133_v24 = vpop.permute.xlu0 %4132 }
 0x2aa   : > { %v2241_v10 = vsel %vm814_vm7, %v2209_v20, %v4139_v39  ;;  %v2242_v37 = vsel %vm814_vm7, %v2210_v4, %v4140_v11  ;;  %v4135_v48 = vunpack.i.h.bf16 %v4133_v24  ;;  %v4134_v49 = vunpack.i.l.bf16 %v4133_v24  ;;  %v4153_v20 = vld [vmem:[%s4251_s29 + $0x38] sm:$0xff]  ;;  %v4154_v24 = vld [vmem:[%s4251_s29 + $0x28] sm:$0xff] }
 0x2ab   : > { %v2258_v61 = vpack.c.bf16 %v2242_v37, %v2241_v10 }
 0x2ac   : > { %v2239_v57 = vsel %vm814_vm7, %v2207_v6, %v4134_v49  ;;  %v2240_v63 = vsel %vm814_vm7, %v2208_v53, %v4135_v48  ;;  %v2306_v33 = vld [vmem:[#allocation2 + $0x70] sm:$0xff] }
 0x2ad   : > { %2274 = vst.msk [vmem:[#allocation2 + $0x80] sm:$0xff] %vm319_vm3, %v2258_v61  ;;  %v2257_v1 = vpack.c.bf16 %v2240_v63, %v2239_v57 }
 0x2ae   : > { %v2305_v62 = vld [vmem:[#allocation2 + $0x68] sm:$0xff] }
 0x2af   : > { %2273 = vst.msk [vmem:[#allocation2 + $0x78] sm:$0xff] %vm319_vm3, %v2257_v1  ;;  %3600 = vmatprep.mubr.msk.bf16.mxu1 %vm319_vm3, %v2305_v62 }
 0x2b0   : > { %3601 = vmatmul.mubr.msk.bf16.gmra.mrb[24].mxu1 %vm319_vm3, %v2306_v33 }
 0x2b4   : > { %v2308_v50 = vld [vmem:[#allocation2 + $0x80] sm:$0xff] }
 0x2b6   : > { %v2307_v55 = vld [vmem:[#allocation2 + $0x78] sm:$0xff] }
 0x2b7   : > { %3604 = vmatprep.mubr.msk.bf16.mxu1 %vm319_vm3, %v2307_v55 }
 0x2b8   : > { %3605 = vmatmul.mubr.msk.bf16.gmra.mrb[28].mxu1 %vm319_vm3, %v2308_v50 }
 0x2b9   : > { %3610 = vmatprep.mubr.msk.bf16.mxu1 %vm319_vm3, %v2275_v32  ;;  %v4155_v32 = vld [vmem:[%s4251_s29 + $0x50] sm:$0xff] }
 0x2c0   : > { %3611 = vmatmul.mubr.msk.bf16.vlgmr.msra.gmra.mrb[0].mxu1 %vm319_vm3, %v5461_v17  ;;  %v2761_v17 = vld [vmem:[#allocation2 + $0x88] sm:$0xff] }
 0x2c1   : > { %3643 = vmatpush3.bf16.msra.mxu1 %v2819_v7  ;;  %3614 = vmatprep.mubr.msk.bf16.mxu1 %vm319_vm3, %v5473_v52 }
 0x2c8   : > { %3615 = vmatmul.mubr.msk.bf16.gmra.mrb[4].mxu1 %vm319_vm3, %v5496_v23 }
 0x2c9   : > { %3618 = vmatprep.mubr.msk.bf16.mxu1 %vm319_vm3, %v5501_v3 }
 0x2d0   : > { %3619 = vmatmul.mubr.msk.bf16.gmra.mrb[8].mxu1 %vm319_vm3, %v5522_v35 }
 0x2d1   : > { %3622 = vmatprep.mubr.msk.bf16.mxu1 %vm319_vm3, %v5527_v2 }
 0x2d8   : > { %3623 = vmatmul.mubr.msk.bf16.gmra.mrb[12].mxu1 %vm319_vm3, %v5548_v42 }
 0x2d9   : > { %3626 = vmatprep.mubr.msk.bf16.mxu1 %vm319_vm3, %v5553_v15 }
 0x2e0   : > { %3627 = vmatmul.mubr.msk.bf16.gmra.mrb[16].mxu1 %vm319_vm3, %v5574_v5 }
 0x2e1   : > { %3630 = vmatprep.mubr.msk.bf16.mxu1 %vm319_vm3, %v5579_v41 }
 0x2e8   : > { %3631 = vmatmul.mubr.msk.bf16.gmra.mrb[20].mxu1 %vm319_vm3, %v5600_v28 }
 0x2e9   : > { %3634 = vmatprep.mubr.msk.bf16.mxu1 %vm319_vm3, %v2304_v54 }
 0x2f0   : > { %3635 = vmatmul.mubr.msk.bf16.gmra.mrb[24].mxu1 %vm319_vm3, %v2305_v62 }
 0x2f1   : > { %3638 = vmatprep.mubr.msk.bf16.mxu1 %vm319_vm3, %v2306_v33 }
 0x2f8   : > { %3639 = vmatmul.mubr.msk.bf16.gmra.mrb[28].mxu1 %vm319_vm3, %v2307_v55 }
 0x2f9   : > { %3644 = vmatprep.mubr.msk.bf16.mxu1 %vm319_vm3, %v5473_v52 }
 0x300   : > { %3645 = vmatmul.mubr.msk.bf16.vlgmr.msra.gmra.mrb[0].mxu1 %vm319_vm3, %v5496_v23  ;;  %v5691_v23 = vld [vmem:[%s5869_s6] ss:$0 sm:$0xff] }
 0x301   : > { %3648 = vmatprep.mubr.msk.bf16.mxu1 %vm319_vm3, %v5501_v3 }
 0x308   : > { %3649 = vmatmul.mubr.msk.bf16.gmra.mrb[4].mxu1 %vm319_vm3, %v5522_v35 }
 0x309   : > { %3652 = vmatprep.mubr.msk.bf16.mxu1 %vm319_vm3, %v5527_v2 }
 0x310   : > { %3653 = vmatmul.mubr.msk.bf16.gmra.mrb[8].mxu1 %vm319_vm3, %v5548_v42 }
 0x311   : > { %3656 = vmatprep.mubr.msk.bf16.mxu1 %vm319_vm3, %v5553_v15 }
 0x318   : > { %3657 = vmatmul.mubr.msk.bf16.gmra.mrb[12].mxu1 %vm319_vm3, %v5574_v5 }
 0x319   : > { %3660 = vmatprep.mubr.msk.bf16.mxu1 %vm319_vm3, %v5579_v41  ;;  %v4147_v41 = vld [vmem:[%s4251_s29 + $0x10] sm:$0xff] }
 0x320   : > { %3661 = vmatmul.mubr.msk.bf16.gmra.mrb[16].mxu1 %vm319_vm3, %v5600_v28 }
 0x321   : > { %3664 = vmatprep.mubr.msk.bf16.mxu1 %vm319_vm3, %v2304_v54 }
 0x328   : > { %3665 = vmatmul.mubr.msk.bf16.gmra.mrb[20].mxu1 %vm319_vm3, %v2305_v62 }
 0x329   : > { %3668 = vmatprep.mubr.msk.bf16.mxu1 %vm319_vm3, %v2306_v33 }
 0x330   : > { %3669 = vmatmul.mubr.msk.bf16.gmra.mrb[24].mxu1 %vm319_vm3, %v2307_v55 }
 0x331   : > { %3672 = vmatprep.mubr.msk.bf16.mxu1 %vm319_vm3, %v2308_v50 }
 0x338   : > { %3673 = vmatmul.mubr.msk.bf16.gmra.mrb[28].mxu1 %vm319_vm3, %v2761_v17  ;;  %v4156_v17 = vld [vmem:[%s4251_s29 + $0x40] sm:$0xff] }
 0x3d3   : > { %v3646_v52 = vpop.f32.mrb[0].mxu1 }
 0x3d4   : > { %v3023_v3 = vmul.f32 %v3646_v52, %v5686_v9  ;;  %v2855_v35 = vpop.f32.mrb[1].mxu1 }
 0x3d5   : > { %v3021_v2 = vmul.f32 %v5686_v9, %v2855_v35  ;;  %v3647_v42 = vpop.f32.mrb[2].mxu1 }
 0x3d6   : > { %v3062_v15 = vadd.f32 %v5691_v23, %v3023_v3  ;;  %v3024_v29 = vmul.f32 %v3647_v42, %v5686_v9  ;;  %v2858_v5 = vpop.f32.mrb[3].mxu1 }
 0x3d7   : > { %v3060_v16 = vadd.f32 %v5691_v23, %v3021_v2  ;;  %v3022_v38 = vmul.f32 %v5686_v9, %v2858_v5  ;;  %v4157_v2 = vld [vmem:[%s4251_s29 + $0x58] sm:$0xff] }
 0x3d8   : > { %v3094_v25 = vadd.f32 %v4147_v41, %v3062_v15  ;;  %v3063_v46 = vadd.f32 %v5691_v23, %v3024_v29  ;;  %v4158_v29 = vld [vmem:[%s4251_s29 + $0x48] sm:$0xff] }
 0x3d9   : > { %v3092_v43 = vadd.f32 %v4148_v21, %v3060_v16  ;;  %v3061_v14 = vadd.f32 %v5691_v23, %v3022_v38 }
 0x3da   : > { %v3126_v59 = vmax.f32 %v3094_v25, 0.0  ;;  %v3095_v36 = vadd.f32 %v4149_v12, %v3063_v46 }
 0x3db   : > { %v3124_v47 = vmax.f32 %v3092_v43, 0.0  ;;  %v3093_v51 = vadd.f32 %v4150_v31, %v3061_v14  ;;  %v3650_v34 = vpop.f32.mrb[4].mxu1  ;;  %v4159_v31 = vld [vmem:[%s4251_s29 + $0x70] sm:$0xff] }
 0x3dc   : > { %3158 = vst.msk [vmem:[%s5706_s12 + $0x10] sm:$0xff] %vm781_vm6, %v3126_v59  ;;  %v3127_v13 = vmax.f32 %v3095_v36, 0.0  ;;  %v3027_v30 = vmul.f32 %v3650_v34, %v5686_v9  ;;  %v2871_v18 = vpop.f32.mrb[5].mxu1 }
 0x3dd   : > { %3156 = vst.msk [vmem:[%s5706_s12] sm:$0xff] %vm781_vm6, %v3124_v47  ;;  %v3125_v58 = vmax.f32 %v3093_v51, 0.0  ;;  %v3025_v45 = vmul.f32 %v5686_v9, %v2871_v18  ;;  %v3651_v40 = vpop.f32.mrb[6].mxu1 }
 0x3de   : > { %3159 = vst.msk [vmem:[%s5706_s12 + $0x18] sm:$0xff] %vm781_vm6, %v3127_v13  ;;  %v3066_v44 = vadd.f32 %v5691_v23, %v3027_v30  ;;  %v3028_v26 = vmul.f32 %v3651_v40, %v5686_v9  ;;  %v2874_v27 = vpop.f32.mrb[7].mxu1  ;;  %v4160_v13 = vld [vmem:[%s4251_s29 + $0x60] sm:$0xff] }
 0x3df   : > { %3157 = vst.msk [vmem:[%s5706_s12 + $0x8] sm:$0xff] %vm781_vm6, %v3125_v58  ;;  %v3064_v8 = vadd.f32 %v5691_v23, %v3025_v45  ;;  %v3026_v28 = vmul.f32 %v5686_v9, %v2874_v27  ;;  %v4161_v45 = vld [vmem:[%s4251_s29 + $0x78] sm:$0xff] }
 0x3e0   : > { %v3098_v60 = vadd.f32 %v4151_v19, %v3066_v44  ;;  %v3067_v54 = vadd.f32 %v5691_v23, %v3028_v26  ;;  %v4162_v26 = vld [vmem:[%s4251_s29 + $0x68] sm:$0xff] }
 0x3e1   : > { %v3096_v56 = vadd.f32 %v4152_v0, %v3064_v8  ;;  %v3065_v11 = vadd.f32 %v5691_v23, %v3026_v28 }
 0x3e2   : > { %v3130_v39 = vmax.f32 %v3098_v60, 0.0  ;;  %v3099_v4 = vadd.f32 %v4153_v20, %v3067_v54 }
 0x3e3   : > { %v3128_v22 = vmax.f32 %v3096_v56, 0.0  ;;  %v3097_v10 = vadd.f32 %v4154_v24, %v3065_v11  ;;  %v3654_v37 = vpop.f32.mrb[8].mxu1  ;;  %v4163_v24 = vld [vmem:[%s4251_s29 + $0x90] sm:$0xff] }
 0x3e4   : > { %3162 = vst.msk [vmem:[%s5706_s12 + $0x30] sm:$0xff] %vm781_vm6, %v3130_v39  ;;  %v3131_v48 = vmax.f32 %v3099_v4, 0.0  ;;  %v3031_v49 = vmul.f32 %v3654_v37, %v5686_v9  ;;  %v2887_v6 = vpop.f32.mrb[9].mxu1 }
 0x3e5   : > { %3160 = vst.msk [vmem:[%s5706_s12 + $0x20] sm:$0xff] %vm781_vm6, %v3128_v22  ;;  %v3129_v53 = vmax.f32 %v3097_v10, 0.0  ;;  %v3029_v61 = vmul.f32 %v5686_v9, %v2887_v6  ;;  %v3655_v57 = vpop.f32.mrb[10].mxu1 }
 0x3e6   : > { %3163 = vst.msk [vmem:[%s5706_s12 + $0x38] sm:$0xff] %vm781_vm6, %v3131_v48  ;;  %v3070_v63 = vadd.f32 %v5691_v23, %v3031_v49  ;;  %v3032_v1 = vmul.f32 %v3655_v57, %v5686_v9  ;;  %v2890_v62 = vpop.f32.mrb[11].mxu1  ;;  %v4164_v48 = vld [vmem:[%s4251_s29 + $0x80] sm:$0xff] }
 0x3e7   : > { %3161 = vst.msk [vmem:[%s5706_s12 + $0x28] sm:$0xff] %vm781_vm6, %v3129_v53  ;;  %v3068_v33 = vadd.f32 %v5691_v23, %v3029_v61  ;;  %v3030_v55 = vmul.f32 %v5686_v9, %v2890_v62  ;;  %v4165_v61 = vld [vmem:[%s4251_s29 + $0x98] sm:$0xff] }
 0x3e8   : > { %v3102_v50 = vadd.f32 %v4155_v32, %v3070_v63  ;;  %v3071_v7 = vadd.f32 %v5691_v23, %v3032_v1  ;;  %v4166_v1 = vld [vmem:[%s4251_s29 + $0x88] sm:$0xff] }
 0x3e9   : > { %v3100_v52 = vadd.f32 %v4156_v17, %v3068_v33  ;;  %v3069_v3 = vadd.f32 %v5691_v23, %v3030_v55 }
 0x3ea   : > { %v3134_v35 = vmax.f32 %v3102_v50, 0.0  ;;  %v3103_v42 = vadd.f32 %v4157_v2, %v3071_v7 }
 0x3eb   : > { %v3132_v15 = vmax.f32 %v3100_v52, 0.0  ;;  %v3101_v5 = vadd.f32 %v4158_v29, %v3069_v3  ;;  %v3658_v16 = vpop.f32.mrb[12].mxu1  ;;  %v4167_v29 = vld [vmem:[%s4251_s29 + $0xb0] sm:$0xff] }
 0x3ec   : > { %3166 = vst.msk [vmem:[%s5706_s12 + $0x50] sm:$0xff] %vm781_vm6, %v3134_v35  ;;  %v3135_v38 = vmax.f32 %v3103_v42, 0.0  ;;  %v3035_v41 = vmul.f32 %v3658_v16, %v5686_v9  ;;  %v2903_v25 = vpop.f32.mrb[13].mxu1 }
 0x3ed   : > { %3164 = vst.msk [vmem:[%s5706_s12 + $0x40] sm:$0xff] %vm781_vm6, %v3132_v15  ;;  %v3133_v46 = vmax.f32 %v3101_v5, 0.0  ;;  %v3033_v21 = vmul.f32 %v5686_v9, %v2903_v25  ;;  %v3659_v43 = vpop.f32.mrb[14].mxu1 }
 0x3ee   : > { %3167 = vst.msk [vmem:[%s5706_s12 + $0x58] sm:$0xff] %vm781_vm6, %v3135_v38  ;;  %v3074_v14 = vadd.f32 %v5691_v23, %v3035_v41  ;;  %v3036_v59 = vmul.f32 %v3659_v43, %v5686_v9  ;;  %v2906_v12 = vpop.f32.mrb[15].mxu1  ;;  %v4168_v38 = vld [vmem:[%s4251_s29 + $0xa0] sm:$0xff] }
 0x3ef   : > { %3165 = vst.msk [vmem:[%s5706_s12 + $0x48] sm:$0xff] %vm781_vm6, %v3133_v46  ;;  %v3072_v36 = vadd.f32 %v5691_v23, %v3033_v21  ;;  %v3034_v47 = vmul.f32 %v5686_v9, %v2906_v12  ;;  %v4169_v21 = vld [vmem:[%s4251_s29 + $0xb8] sm:$0xff] }
 0x3f0   : > { %v3106_v51 = vadd.f32 %v4159_v31, %v3074_v14  ;;  %v3075_v34 = vadd.f32 %v5691_v23, %v3036_v59  ;;  %v4170_v59 = vld [vmem:[%s4251_s29 + $0xa8] sm:$0xff] }
 0x3f1   : > { %v3104_v30 = vadd.f32 %v4160_v13, %v3072_v36  ;;  %v3073_v18 = vadd.f32 %v5691_v23, %v3034_v47 }
 0x3f2   : > { %v3138_v58 = vmax.f32 %v3106_v51, 0.0  ;;  %v3107_v40 = vadd.f32 %v4161_v45, %v3075_v34 }
 0x3f3   : > { %v3136_v44 = vmax.f32 %v3104_v30, 0.0  ;;  %v3105_v27 = vadd.f32 %v4162_v26, %v3073_v18  ;;  %v3662_v8 = vpop.f32.mrb[16].mxu1  ;;  %v4171_v26 = vld [vmem:[%s4251_s29 + $0xd0] sm:$0xff] }
 0x3f4   : > { %3170 = vst.msk [vmem:[%s5706_s12 + $0x70] sm:$0xff] %vm781_vm6, %v3138_v58  ;;  %v3139_v28 = vmax.f32 %v3107_v40, 0.0  ;;  %v3039_v19 = vmul.f32 %v3662_v8, %v5686_v9  ;;  %v2919_v60 = vpop.f32.mrb[17].mxu1 }
 0x3f5   : > { %3168 = vst.msk [vmem:[%s5706_s12 + $0x60] sm:$0xff] %vm781_vm6, %v3136_v44  ;;  %v3137_v54 = vmax.f32 %v3105_v27, 0.0  ;;  %v3037_v0 = vmul.f32 %v5686_v9, %v2919_v60  ;;  %v3663_v56 = vpop.f32.mrb[18].mxu1 }
 0x3f6   : > { %3171 = vst.msk [vmem:[%s5706_s12 + $0x78] sm:$0xff] %vm781_vm6, %v3139_v28  ;;  %v3078_v11 = vadd.f32 %v5691_v23, %v3039_v19  ;;  %v3040_v39 = vmul.f32 %v3663_v56, %v5686_v9  ;;  %v2922_v20 = vpop.f32.mrb[19].mxu1  ;;  %v4172_v28 = vld [vmem:[%s4251_s29 + $0xc0] sm:$0xff] }
 0x3f7   : > { %3169 = vst.msk [vmem:[%s5706_s12 + $0x68] sm:$0xff] %vm781_vm6, %v3137_v54  ;;  %v3076_v4 = vadd.f32 %v5691_v23, %v3037_v0  ;;  %v3038_v22 = vmul.f32 %v5686_v9, %v2922_v20  ;;  %v4173_v0 = vld [vmem:[%s4251_s29 + $0xd8] sm:$0xff] }
 0x3f8   : > { %v3110_v10 = vadd.f32 %v4163_v24, %v3078_v11  ;;  %v3079_v37 = vadd.f32 %v5691_v23, %v3040_v39  ;;  %v4174_v39 = vld [vmem:[%s4251_s29 + $0xc8] sm:$0xff] }
 0x3f9   : > { %v3108_v49 = vadd.f32 %v4164_v48, %v3076_v4  ;;  %v3077_v6 = vadd.f32 %v5691_v23, %v3038_v22 }
 0x3fa   : > { %v3142_v53 = vmax.f32 %v3110_v10, 0.0  ;;  %v3111_v57 = vadd.f32 %v4165_v61, %v3079_v37 }
 0x3fb   : > { %v3140_v63 = vmax.f32 %v3108_v49, 0.0  ;;  %v3109_v62 = vadd.f32 %v4166_v1, %v3077_v6  ;;  %v3666_v33 = vpop.f32.mrb[20].mxu1  ;;  %v4175_v1 = vld [vmem:[%s4251_s29 + $0xf0] sm:$0xff] }
 0x3fc   : > { %3174 = vst.msk [vmem:[%s5706_s12 + $0x90] sm:$0xff] %vm781_vm6, %v3142_v53  ;;  %v3143_v55 = vmax.f32 %v3111_v57, 0.0  ;;  %v3043_v32 = vmul.f32 %v3666_v33, %v5686_v9  ;;  %v2935_v50 = vpop.f32.mrb[21].mxu1 }
 0x3fd   : > { %3172 = vst.msk [vmem:[%s5706_s12 + $0x80] sm:$0xff] %vm781_vm6, %v3140_v63  ;;  %v3141_v7 = vmax.f32 %v3109_v62, 0.0  ;;  %v3041_v17 = vmul.f32 %v5686_v9, %v2935_v50  ;;  %v3667_v52 = vpop.f32.mrb[22].mxu1 }
 0x3fe   : > { %3175 = vst.msk [vmem:[%s5706_s12 + $0x98] sm:$0xff] %vm781_vm6, %v3143_v55  ;;  %v3082_v3 = vadd.f32 %v5691_v23, %v3043_v32  ;;  %v3044_v35 = vmul.f32 %v3667_v52, %v5686_v9  ;;  %v2938_v2 = vpop.f32.mrb[23].mxu1  ;;  %v4176_v55 = vld [vmem:[%s4251_s29 + $0xe0] sm:$0xff] }
 0x3ff   : > { %3173 = vst.msk [vmem:[%s5706_s12 + $0x88] sm:$0xff] %vm781_vm6, %v3141_v7  ;;  %v3080_v42 = vadd.f32 %v5691_v23, %v3041_v17  ;;  %v3042_v15 = vmul.f32 %v5686_v9, %v2938_v2  ;;  %v4177_v17 = vld [vmem:[%s4251_s29 + $0xf8] sm:$0xff] }
 0x400   : > { %v3114_v5 = vadd.f32 %v4167_v29, %v3082_v3  ;;  %v3083_v16 = vadd.f32 %v5691_v23, %v3044_v35  ;;  %v4178_v35 = vld [vmem:[%s4251_s29 + $0xe8] sm:$0xff] }
 0x401   : > { %v3112_v41 = vadd.f32 %v4168_v38, %v3080_v42  ;;  %v3081_v25 = vadd.f32 %v5691_v23, %v3042_v15 }
 0x402   : > { %v3146_v46 = vmax.f32 %v3114_v5, 0.0  ;;  %v3115_v43 = vadd.f32 %v4169_v21, %v3083_v16 }
 0x403   : > { %v3144_v14 = vmax.f32 %v3112_v41, 0.0  ;;  %v3113_v12 = vadd.f32 %v4170_v59, %v3081_v25  ;;  %v3670_v36 = vpop.f32.mrb[24].mxu1 }
 0x404   : > { %3178 = vst.msk [vmem:[%s5706_s12 + $0xb0] sm:$0xff] %vm781_vm6, %v3146_v46  ;;  %v3147_v47 = vmax.f32 %v3115_v43, 0.0  ;;  %v3047_v31 = vmul.f32 %v3670_v36, %v5686_v9  ;;  %v2951_v51 = vpop.f32.mrb[25].mxu1 }
 0x405   : > { %3176 = vst.msk [vmem:[%s5706_s12 + $0xa0] sm:$0xff] %vm781_vm6, %v3144_v14  ;;  %v3145_v34 = vmax.f32 %v3113_v12, 0.0  ;;  %v3045_v13 = vmul.f32 %v5686_v9, %v2951_v51  ;;  %v3671_v30 = vpop.f32.mrb[26].mxu1 }
 0x406   : > { %3179 = vst.msk [vmem:[%s5706_s12 + $0xb8] sm:$0xff] %vm781_vm6, %v3147_v47  ;;  %v3086_v18 = vadd.f32 %v5691_v23, %v3047_v31  ;;  %v3048_v58 = vmul.f32 %v3671_v30, %v5686_v9  ;;  %v2954_v45 = vpop.f32.mrb[27].mxu1 }
 0x407   : > { %3177 = vst.msk [vmem:[%s5706_s12 + $0xa8] sm:$0xff] %vm781_vm6, %v3145_v34  ;;  %v3084_v40 = vadd.f32 %v5691_v23, %v3045_v13  ;;  %v3046_v44 = vmul.f32 %v5686_v9, %v2954_v45 }
 0x408   : > { %v3118_v27 = vadd.f32 %v4171_v26, %v3086_v18  ;;  %v3087_v8 = vadd.f32 %v5691_v23, %v3048_v58 }
 0x409   : > { %v3116_v19 = vadd.f32 %v4172_v28, %v3084_v40  ;;  %v3085_v60 = vadd.f32 %v5691_v23, %v3046_v44 }
 0x40a   : > { %v3150_v54 = vmax.f32 %v3118_v27, 0.0  ;;  %v3119_v56 = vadd.f32 %v4173_v0, %v3087_v8 }
 0x40b   : > { %v3148_v11 = vmax.f32 %v3116_v19, 0.0  ;;  %v3117_v20 = vadd.f32 %v4174_v39, %v3085_v60  ;;  %v3674_v4 = vpop.f32.mrb[28].mxu1 }
 0x40c   : > { %3182 = vst.msk [vmem:[%s5706_s12 + $0xd0] sm:$0xff] %vm781_vm6, %v3150_v54  ;;  %v3151_v22 = vmax.f32 %v3119_v56, 0.0  ;;  %v3051_v24 = vmul.f32 %v3674_v4, %v5686_v9  ;;  %v2967_v10 = vpop.f32.mrb[29].mxu1 }
 0x40d   : > { %3180 = vst.msk [vmem:[%s5706_s12 + $0xc0] sm:$0xff] %vm781_vm6, %v3148_v11  ;;  %v3149_v37 = vmax.f32 %v3117_v20, 0.0  ;;  %v3049_v48 = vmul.f32 %v5686_v9, %v2967_v10  ;;  %v3675_v49 = vpop.f32.mrb[30].mxu1 }
 0x40e   : > { %3183 = vst.msk [vmem:[%s5706_s12 + $0xd8] sm:$0xff] %vm781_vm6, %v3151_v22  ;;  %v3090_v6 = vadd.f32 %v5691_v23, %v3051_v24  ;;  %v3052_v53 = vmul.f32 %v3675_v49, %v5686_v9  ;;  %v2970_v61 = vpop.f32.mrb[31].mxu1 }
 0x40f   : > { %3181 = vst.msk [vmem:[%s5706_s12 + $0xc8] sm:$0xff] %vm781_vm6, %v3149_v37  ;;  %v3088_v57 = vadd.f32 %v5691_v23, %v3049_v48  ;;  %v3050_v63 = vmul.f32 %v5686_v9, %v2970_v61 }
 0x410   : > { %v3122_v62 = vadd.f32 %v4175_v1, %v3090_v6  ;;  %v3091_v33 = vadd.f32 %v5691_v23, %v3052_v53 }
 0x411   : > { %v3120_v32 = vadd.f32 %v4176_v55, %v3088_v57  ;;  %v3089_v50 = vadd.f32 %v5691_v23, %v3050_v63 }
 0x412   : > { %v3154_v7 = vmax.f32 %v3122_v62, 0.0  ;;  %v3123_v52 = vadd.f32 %v4177_v17, %v3091_v33 }
 0x413   : > { %v3152_v3 = vmax.f32 %v3120_v32, 0.0  ;;  %v3121_v2 = vadd.f32 %v4178_v35, %v3089_v50 }
 0x414   : > { %3186 = vst.msk [vmem:[%s5706_s12 + $0xf0] sm:$0xff] %vm781_vm6, %v3154_v7  ;;  %v3155_v42 = vmax.f32 %v3123_v52, 0.0 }
 0x415   : > { %3184 = vst.msk [vmem:[%s5706_s12 + $0xe0] sm:$0xff] %vm781_vm6, %v3152_v3  ;;  %v3153_v9 = vmax.f32 %v3121_v2, 0.0 }
 0x416   : > { %3187 = vst.msk [vmem:[%s5706_s12 + $0xf8] sm:$0xff] %vm781_vm6, %v3155_v42 }
 0x417   : > { %3185 = vst.msk [vmem:[%s5706_s12 + $0xe8] sm:$0xff] %vm781_vm6, %v3153_v9 }
 0x418 PF: > { %s17_s24 = sadd.s32 1, %s4185_s24  }
 0x419   : > { %p14_p4 = scmp.ge.s32.totalorder %s17_s24, 4  }
 0x41b   :  { %16 = sbr.rel (!%p14_p4) target bundleno = 1 (0x1), region = 85 }

</bundles_post_ra>
